<compile_context>
chip_gen: v7x
topology: tpu7x:2x2x1
jax: 0.10.0
libtpu: 0.0.40
codegen_flags: <defaults>
</compile_context>

<pallas_src>
import math
import functools

import jax
import jax.numpy as jnp
from jax import lax
from jax.experimental import pallas as pl
from jax.experimental.pallas import tpu as pltpu


@functools.lru_cache(maxsize=None)
def _vmem_limit_bytes():
    """~75% of physical per-core VMEM (headroom for double buffers / compiler scratch)."""
    try:
        cap = int(pltpu.get_tpu_info().vmem_capacity_bytes)
    except Exception:
        cap = 64 * 1024 * 1024          # conservative fallback (v7x physical per-TC VMEM)
    return min((cap * 3) // 4, 100 * 1024 * 1024)


def _pick_tile(total, target, align):
    """Largest divisor of `total` that is <= target and a multiple of `align`;
    falls back to `total` itself (full dim is always a legal block)."""
    if total <= target:
        return total
    t = (target // align) * align
    while t >= align:
        if total % t == 0:
            return t
        t -= align
    return total


def _ffn_tiles(M, F):
    if _vmem_limit_bytes() >= 80 * 1024 * 1024:    # v5e / v6e: VMEM to spare
        tm_t, tf_t = 512, 1024
    else:                                          # v7x: 64 MiB physical VMEM
        tm_t, tf_t = 256, 512
    return _pick_tile(M, tm_t, 8), _pick_tile(F, tf_t, 128)


# ----------------------------------------------------------------------------
# K1: per-batch attention core
#     fused QKV projection (one 2-D matmul over H*L rows) + masked softmax + PV
# ----------------------------------------------------------------------------

def _attention_kernel(x_ref, bias_ref, wqkv_ref, o_ref, *, heads, seq_len, head_dim):
    L, D = seq_len, head_dim

    # One big (H*L, D) @ (D, 3D) matmul; Q slice of wqkv is pre-scaled by 1/sqrt(D).
    qkv = jnp.dot(x_ref[...], wqkv_ref[...], preferred_element_type=jnp.float32)
    q_all = qkv[:, 0:D].astype(jnp.bfloat16)
    k_all = qkv[:, D:2 * D].astype(jnp.bfloat16)
    v_all = qkv[:, 2 * D:3 * D].astype(jnp.bfloat16)

    bias = bias_ref[...]                            # (1, L) f32 additive key mask (0 / -1e20)

    # Heads are contiguous L-row chunks of the (H*L, D) buffer (raw PyTorch reshape).
    for h in range(heads):                          # static unroll
        rows = slice(h * L, (h + 1) * L)
        q = q_all[rows, :]
        k = k_all[rows, :]
        v = v_all[rows, :]

        s = jnp.einsum("qd,kd->qk", q, k, preferred_element_type=jnp.float32) + bias
        m = jnp.max(s, axis=-1, keepdims=True)
        e = jnp.exp(s - m)
        p = e * pl.reciprocal(jnp.sum(e, axis=-1, keepdims=True), approx=True)

        ctx = jnp.dot(p.astype(jnp.bfloat16), v, preferred_element_type=jnp.float32)
        o_ref[rows, :] = ctx.astype(o_ref.dtype)


def attention_core(x, mask_bias, p, heads):
    B, L, E = x.shape
    D = E // heads
    x2d = x.reshape(B, heads * L, D)                # raw reshape (free, contiguous)

    out = pl.pallas_call(
        functools.partial(_attention_kernel, heads=heads, seq_len=L, head_dim=D),
        grid=(B,),
        in_specs=[
            pl.BlockSpec((None, heads * L, D), lambda b: (b, 0, 0)),   # x (per batch elem)
            pl.BlockSpec((None, 1, L), lambda b: (b, 0, 0)),           # additive mask bias
            pl.BlockSpec((D, 3 * D), lambda b: (0, 0)),                # fused Wqkv (resident)
        ],
        out_specs=pl.BlockSpec((None, heads * L, D), lambda b: (b, 0, 0)),
        out_shape=jax.ShapeDtypeStruct((B, heads * L, D), jnp.bfloat16),
        compiler_params=pltpu.CompilerParams(
            dimension_semantics=("parallel",),
            vmem_limit_bytes=_vmem_limit_bytes()),
    )(x2d, mask_bias, p["wqkv"])
    return out.reshape(B, L, E)                     # raw reshape back, like PyTorch


# ----------------------------------------------------------------------------
# K2: fc_out + residual + LN1 + FFN (F tiled, f32 VMEM accumulator) + residual + LN2
#     grid over (B*L row tiles, F tiles); all blocks lane-dense (last dim E or tf)
# ----------------------------------------------------------------------------

def _block_tail_kernel(attn_ref, x_ref, wo_ref, bo_ref, g1_ref, be1_ref,
                       w1_ref, b1_ref, w2_ref, b2_ref, g2_ref, be2_ref,
                       o_ref, x1_ref, acc_ref, *, eps):
    j = pl.program_id(1)

    @pl.when(j == 0)
    def _():
        # fc_out + residual + LayerNorm1, kept in f32 VMEM scratch for all F tiles.
        y = jnp.dot(attn_ref[...], wo_ref[...],
                    preferred_element_type=jnp.float32) + bo_ref[...]
        r = y + x_ref[...].astype(jnp.float32)
        mu = jnp.mean(r, axis=-1, keepdims=True)
        var = jnp.mean((r - mu) ** 2, axis=-1, keepdims=True)
        x1_ref[...] = (r - mu) * lax.rsqrt(var + eps) * g1_ref[...] + be1_ref[...]
        acc_ref[...] = jnp.zeros_like(acc_ref)

    # FFN: w1 -> ReLU -> w2, accumulated over F tiles in f32.
    h = jnp.dot(x1_ref[...].astype(jnp.bfloat16), w1_ref[...],
                preferred_element_type=jnp.float32) + b1_ref[...]
    h = jnp.maximum(h, 0.0).astype(jnp.bfloat16)
    acc_ref[...] += jnp.dot(h, w2_ref[...], preferred_element_type=jnp.float32)

    @pl.when(j == pl.num_programs(1) - 1)
    def _():
        r = acc_ref[...] + b2_ref[...] + x1_ref[...]
        mu = jnp.mean(r, axis=-1, keepdims=True)
        var = jnp.mean((r - mu) ** 2, axis=-1, keepdims=True)
        o_ref[...] = ((r - mu) * lax.rsqrt(var + eps) * g2_ref[...]
                      + be2_ref[...]).astype(o_ref.dtype)


def block_tail(attn, x, p, eps=1e-5):
    B, L, E = x.shape
    M = B * L
    F = p["w1"].shape[1]
    attn2 = attn.reshape(M, E)
    x2 = x.reshape(M, E)

    tm, tf = _ffn_tiles(M, F)
    grid = (M // tm, F // tf)

    out = pl.pallas_call(
        functools.partial(_block_tail_kernel, eps=eps),
        grid=grid,
        in_specs=[
            pl.BlockSpec((tm, E), lambda i, j: (i, 0)),    # attn context (resident over j)
            pl.BlockSpec((tm, E), lambda i, j: (i, 0)),    # residual x   (resident over j)
            pl.BlockSpec((E, E), lambda i, j: (0, 0)),     # wo
            pl.BlockSpec((1, E), lambda i, j: (0, 0)),     # bo
            pl.BlockSpec((1, E), lambda i, j: (0, 0)),     # ln1 gamma
            pl.BlockSpec((1, E), lambda i, j: (0, 0)),     # ln1 beta
            pl.BlockSpec((E, tf), lambda i, j: (0, j)),    # w1 tile
            pl.BlockSpec((1, tf), lambda i, j: (0, j)),    # b1 tile
            pl.BlockSpec((tf, E), lambda i, j: (j, 0)),    # w2 tile
            pl.BlockSpec((1, E), lambda i, j: (0, 0)),     # b2
            pl.BlockSpec((1, E), lambda i, j: (0, 0)),     # ln2 gamma
            pl.BlockSpec((1, E), lambda i, j: (0, 0)),     # ln2 beta
        ],
        out_specs=pl.BlockSpec((tm, E), lambda i, j: (i, 0)),
        out_shape=jax.ShapeDtypeStruct((M, E), jnp.bfloat16),
        scratch_shapes=[pltpu.VMEM((tm, E), jnp.float32),    # x1 (LN1 output)
                        pltpu.VMEM((tm, E), jnp.float32)],   # FFN accumulator
        compiler_params=pltpu.CompilerParams(
            dimension_semantics=("parallel", "arbitrary"),
            vmem_limit_bytes=_vmem_limit_bytes()),
    )(attn2, x2, p["wo"], p["bo"], p["ln1_g"], p["ln1_b"],
      p["w1"], p["b1"], p["w2"], p["b2"], p["ln2_g"], p["ln2_b"])
    return out.reshape(B, L, E)


# ----------------------------------------------------------------------------
# Model glue
# ----------------------------------------------------------------------------

def transformer_block(x, mask_bias, p, heads):
    attn = attention_core(x, mask_bias, p, heads)
    return block_tail(attn, x, p)


def transformer_encoder(X, mask, params, heads):
    B, L = X.shape
    pe = params["pos_emb"][:L, :]
    # embedding gather is data-dependent -> stays in JAX glue (fuses with the add in XLA)
    we = jnp.take(params["word_emb"], X, axis=0)
    out = (we + pe).astype(jnp.bfloat16)                   # dropout = identity (inference)
    if not params["layers"]:
        return out
    # padding mask (B, 1, 1, L) -> additive f32 bias (0 / -1e20), shared by all layers
    mask_bias = jnp.where(mask == 0, -1e20, 0.0).astype(jnp.float32).reshape(B, 1, L)
    for layer_p in params["layers"]:
        out = transformer_block(out, mask_bias, layer_p, heads)
    return out


# ----------------------------------------------------------------------------
# Deterministic parameter init (f32) + device-layout prep (bf16 matmul weights)
# ----------------------------------------------------------------------------

def init_params(key, vocab_size, max_seq_len, emb_size, n_layers, heads, forward_expansion):
    D = emb_size // heads
    F = forward_expansion * emb_size
    keys = jax.random.split(key, 1 + max(n_layers, 1))

    word_emb = jax.random.normal(keys[0], (vocab_size, emb_size), jnp.float32) * 0.02

    position = jnp.arange(max_seq_len, dtype=jnp.float32)[:, None]
    div_term = jnp.exp(jnp.arange(0, emb_size, 2, dtype=jnp.float32)
                       * (-math.log(10000.0) / emb_size))
    pos_emb = jnp.zeros((max_seq_len, emb_size), jnp.float32)
    pos_emb = pos_emb.at[:, 0::2].set(jnp.sin(position * div_term))
    pos_emb = pos_emb.at[:, 1::2].set(jnp.cos(position * div_term))

    layers = []
    for li in range(n_layers):
        ks = jax.random.split(keys[1 + li], 8)
        layers.append(dict(
            wq=jax.random.normal(ks[0], (D, D), jnp.float32) * 0.1,
            wk=jax.random.normal(ks[1], (D, D), jnp.float32) * 0.1,
            wv=jax.random.normal(ks[2], (D, D), jnp.float32) * 0.1,
            wo=jax.random.normal(ks[3], (emb_size, emb_size), jnp.float32) * 0.1,
            bo=jax.random.normal(ks[4], (emb_size,), jnp.float32) * 0.01,
            ln1_g=jnp.ones((emb_size,), jnp.float32),
            ln1_b=jnp.zeros((emb_size,), jnp.float32),
            w1=jax.random.normal(ks[5], (emb_size, F), jnp.float32) * 0.1,
            b1=jax.random.normal(ks[6], (F,), jnp.float32) * 0.01,
            w2=jax.random.normal(ks[7], (F, emb_size), jnp.float32) * 0.1,
            b2=jnp.zeros((emb_size,), jnp.float32),
            ln2_g=jnp.ones((emb_size,), jnp.float32),
            ln2_b=jnp.zeros((emb_size,), jnp.float32),
        ))
    return dict(word_emb=word_emb, pos_emb=pos_emb, layers=layers)


def prepare_params(params):
    """bf16 matmul weights (fused Wq|Wk|Wv with 1/sqrt(D) folded into Q),
    f32 biases / LayerNorm params reshaped to (1, E)/(1, F)."""
    layers = []
    for p in params["layers"]:
        E = p["wo"].shape[0]
        F = p["w1"].shape[1]
        D = p["wq"].shape[0]
        inv_scale = 1.0 / (float(D) ** 0.5)
        wqkv = jnp.concatenate([p["wq"] * inv_scale, p["wk"], p["wv"]], axis=1)
        layers.append(dict(
            wqkv=wqkv.astype(jnp.bfloat16),
            wo=p["wo"].astype(jnp.bfloat16),
            bo=p["bo"].reshape(1, E).astype(jnp.float32),
            ln1_g=p["ln1_g"].reshape(1, E).astype(jnp.float32),
            ln1_b=p["ln1_b"].reshape(1, E).astype(jnp.float32),
            w1=p["w1"].astype(jnp.bfloat16),
            b1=p["b1"].reshape(1, F).astype(jnp.float32),
            w2=p["w2"].astype(jnp.bfloat16),
            b2=p["b2"].reshape(1, E).astype(jnp.float32),
            ln2_g=p["ln2_g"].reshape(1, E).astype(jnp.float32),
            ln2_b=p["ln2_b"].reshape(1, E).astype(jnp.float32),
        ))
    return dict(word_emb=params["word_emb"], pos_emb=params["pos_emb"], layers=layers)


# ----------------------------------------------------------------------------
# main
# ----------------------------------------------------------------------------

if __name__ == "__main__":
    B, L = 2, 8
    vocab_size, emb_size, n_layers, heads, forward_expansion = 50, 32, 2, 4, 4
    assert emb_size % heads == 0

    key = jax.random.PRNGKey(0)
    pkey, xkey = jax.random.split(key)

    params = prepare_params(
        init_params(pkey, vocab_size, L, emb_size, n_layers, heads, forward_expansion))

    X = jax.random.randint(xkey, (B, L), 0, vocab_size, dtype=jnp.int32)   # token ids
    mask = jnp.ones((B, 1, 1, L), dtype=jnp.int32)                         # padding mask (all valid)

    encoder = jax.jit(functools.partial(transformer_encoder, heads=heads))
    out = encoder(X, mask, params)
    out = jax.block_until_ready(out)
    assert out.shape == (B, L, emb_size)
    print("KERNEL_OK")
</pallas_src>

<mosaic_0001>
module attributes {stable_mosaic.version = 11 : i64} {
  func.func @_attention_kernel(%arg0: i32, %arg1: memref<1x32x8xbf16, #tpu.memory_space<vmem>>, %arg2: memref<1x1x8xf32, #tpu.memory_space<vmem>>, %arg3: memref<8x24xbf16, #tpu.memory_space<vmem>>, %arg4: memref<1x32x8xbf16, #tpu.memory_space<vmem>>) attributes {dimension_semantics = [#tpu.dimension_semantics<parallel>], iteration_bounds = array<i64: 2>, scalar_prefetch = 0 : i64, scratch_operands = 0 : i64, tpu.core_type = #tpu.core_type<tc>, window_params = [{transform_indices = @transform_0, window_bounds = array<i64: 1, 32, 8>}, {transform_indices = @transform_1, window_bounds = array<i64: 1, 1, 8>}, {pipeline_mode = #tpu.pipeline_mode<synchronous>, transform_indices = @transform_2, window_bounds = array<i64: 8, 24>}, {transform_indices = @transform_3, window_bounds = array<i64: 1, 32, 8>}]} {
    %c0 = arith.constant 0 : index
    %c0_0 = arith.constant 0 : index
    %c0_1 = arith.constant 0 : index
    %0 = vector.load %arg1[%c0, %c0_0, %c0_1] : memref<1x32x8xbf16, #tpu.memory_space<vmem>>, vector<1x32x8xbf16>
    %1 = vector.shape_cast %0 : vector<1x32x8xbf16> to vector<32x8xbf16>
    %c0_2 = arith.constant 0 : index
    %c0_3 = arith.constant 0 : index
    %2 = vector.load %arg3[%c0_2, %c0_3] : memref<8x24xbf16, #tpu.memory_space<vmem>>, vector<8x24xbf16>
    %cst = arith.constant dense<0.000000e+00> : vector<32x24xf32>
    %3 = tpu.matmul %1, %2, %cst {dimension_numbers = #tpu.dot_dimension_numbers<[1], [0], [0], [1], [0, 0, 1, 1], [], []>} : vector<32x8xbf16>, vector<8x24xbf16>, vector<32x24xf32> -> vector<32x24xf32>
    %4 = vector.extract_strided_slice %3 {offsets = [0, 0], sizes = [32, 8], strides = [1, 1]} : vector<32x24xf32> to vector<32x8xf32>
    %5 = arith.truncf %4 : vector<32x8xf32> to vector<32x8xbf16>
    %6 = vector.extract_strided_slice %3 {offsets = [0, 8], sizes = [32, 8], strides = [1, 1]} : vector<32x24xf32> to vector<32x8xf32>
    %7 = arith.truncf %6 : vector<32x8xf32> to vector<32x8xbf16>
    %8 = vector.extract_strided_slice %3 {offsets = [0, 16], sizes = [32, 8], strides = [1, 1]} : vector<32x24xf32> to vector<32x8xf32>
    %9 = arith.truncf %8 : vector<32x8xf32> to vector<32x8xbf16>
    %c0_4 = arith.constant 0 : index
    %c0_5 = arith.constant 0 : index
    %c0_6 = arith.constant 0 : index
    %10 = vector.load %arg2[%c0_4, %c0_5, %c0_6] : memref<1x1x8xf32, #tpu.memory_space<vmem>>, vector<1x1x8xf32>
    %11 = vector.shape_cast %10 : vector<1x1x8xf32> to vector<1x8xf32>
    %12 = vector.extract_strided_slice %5 {offsets = [0, 0], sizes = [8, 8], strides = [1, 1]} : vector<32x8xbf16> to vector<8x8xbf16>
    %13 = vector.extract_strided_slice %7 {offsets = [0, 0], sizes = [8, 8], strides = [1, 1]} : vector<32x8xbf16> to vector<8x8xbf16>
    %14 = vector.extract_strided_slice %9 {offsets = [0, 0], sizes = [8, 8], strides = [1, 1]} : vector<32x8xbf16> to vector<8x8xbf16>
    "tpu.trace_start"() <{level = 10 : i32, message = "qd,kd->qk"}> : () -> ()
    %cst_7 = arith.constant dense<0.000000e+00> : vector<8x8xf32>
    %15 = tpu.matmul %12, %13, %cst_7 {dimension_numbers = #tpu.dot_dimension_numbers<[1], [1], [0], [0], [0, 0, 1, 0], [], []>} : vector<8x8xbf16>, vector<8x8xbf16>, vector<8x8xf32> -> vector<8x8xf32>
    "tpu.trace_stop"() : () -> ()
    %16 = vector.broadcast %11 : vector<1x8xf32> to vector<8x8xf32>
    %17 = arith.addf %15, %16 : vector<8x8xf32>
    %cst_8 = arith.constant dense<0xFF800000> : vector<8xf32>
    %18 = vector.multi_reduction <maximumf>, %17, %cst_8 [1] : vector<8x8xf32> to vector<8xf32>
    %19 = vector.shape_cast %18 : vector<8xf32> to vector<8x1xf32>
    %20 = vector.broadcast %19 : vector<8x1xf32> to vector<8x8xf32>
    %21 = arith.subf %17, %20 : vector<8x8xf32>
    %22 = math.exp %21 : vector<8x8xf32>
    %cst_9 = arith.constant dense<0.000000e+00> : vector<8xf32>
    %23 = vector.multi_reduction <add>, %22, %cst_9 [1] : vector<8x8xf32> to vector<8xf32>
    %24 = vector.shape_cast %23 : vector<8xf32> to vector<8x1xf32>
    %25 = tpu.reciprocal %24 {approx = true} : vector<8x1xf32> -> vector<8x1xf32>
    %26 = vector.broadcast %25 : vector<8x1xf32> to vector<8x8xf32>
    %27 = arith.mulf %22, %26 : vector<8x8xf32>
    %28 = arith.truncf %27 : vector<8x8xf32> to vector<8x8xbf16>
    %cst_10 = arith.constant dense<0.000000e+00> : vector<8x8xf32>
    %29 = tpu.matmul %28, %14, %cst_10 {dimension_numbers = #tpu.dot_dimension_numbers<[1], [0], [0], [1], [0, 0, 1, 1], [], []>} : vector<8x8xbf16>, vector<8x8xbf16>, vector<8x8xf32> -> vector<8x8xf32>
    %30 = arith.truncf %29 : vector<8x8xf32> to vector<8x8xbf16>
    %c0_11 = arith.constant 0 : index
    %c0_12 = arith.constant 0 : index
    %c0_13 = arith.constant 0 : index
    %31 = vector.load %arg4[%c0_11, %c0_12, %c0_13] : memref<1x32x8xbf16, #tpu.memory_space<vmem>>, vector<1x8x8xbf16>
    %32 = vector.shape_cast %31 : vector<1x8x8xbf16> to vector<8x8xbf16>
    %33 = vector.shape_cast %30 : vector<8x8xbf16> to vector<1x8x8xbf16>
    tpu.vector_store %arg4[%c0_11, %c0_12, %c0_13], %33 {strides = array<i32>} : memref<1x32x8xbf16, #tpu.memory_space<vmem>>, vector<1x8x8xbf16>,
    %34 = vector.extract_strided_slice %5 {offsets = [8, 0], sizes = [8, 8], strides = [1, 1]} : vector<32x8xbf16> to vector<8x8xbf16>
    %35 = vector.extract_strided_slice %7 {offsets = [8, 0], sizes = [8, 8], strides = [1, 1]} : vector<32x8xbf16> to vector<8x8xbf16>
    %36 = vector.extract_strided_slice %9 {offsets = [8, 0], sizes = [8, 8], strides = [1, 1]} : vector<32x8xbf16> to vector<8x8xbf16>
    "tpu.trace_start"() <{level = 10 : i32, message = "qd,kd->qk"}> : () -> ()
    %cst_14 = arith.constant dense<0.000000e+00> : vector<8x8xf32>
    %37 = tpu.matmul %34, %35, %cst_14 {dimension_numbers = #tpu.dot_dimension_numbers<[1], [1], [0], [0], [0, 0, 1, 0], [], []>} : vector<8x8xbf16>, vector<8x8xbf16>, vector<8x8xf32> -> vector<8x8xf32>
    "tpu.trace_stop"() : () -> ()
    %38 = vector.broadcast %11 : vector<1x8xf32> to vector<8x8xf32>
    %39 = arith.addf %37, %38 : vector<8x8xf32>
    %cst_15 = arith.constant dense<0xFF800000> : vector<8xf32>
    %40 = vector.multi_reduction <maximumf>, %39, %cst_15 [1] : vector<8x8xf32> to vector<8xf32>
    %41 = vector.shape_cast %40 : vector<8xf32> to vector<8x1xf32>
    %42 = vector.broadcast %41 : vector<8x1xf32> to vector<8x8xf32>
    %43 = arith.subf %39, %42 : vector<8x8xf32>
    %44 = math.exp %43 : vector<8x8xf32>
    %cst_16 = arith.constant dense<0.000000e+00> : vector<8xf32>
    %45 = vector.multi_reduction <add>, %44, %cst_16 [1] : vector<8x8xf32> to vector<8xf32>
    %46 = vector.shape_cast %45 : vector<8xf32> to vector<8x1xf32>
    %47 = tpu.reciprocal %46 {approx = true} : vector<8x1xf32> -> vector<8x1xf32>
    %48 = vector.broadcast %47 : vector<8x1xf32> to vector<8x8xf32>
    %49 = arith.mulf %44, %48 : vector<8x8xf32>
    %50 = arith.truncf %49 : vector<8x8xf32> to vector<8x8xbf16>
    %cst_17 = arith.constant dense<0.000000e+00> : vector<8x8xf32>
    %51 = tpu.matmul %50, %36, %cst_17 {dimension_numbers = #tpu.dot_dimension_numbers<[1], [0], [0], [1], [0, 0, 1, 1], [], []>} : vector<8x8xbf16>, vector<8x8xbf16>, vector<8x8xf32> -> vector<8x8xf32>
    %52 = arith.truncf %51 : vector<8x8xf32> to vector<8x8xbf16>
    %c0_18 = arith.constant 0 : index
    %c8 = arith.constant 8 : index
    %c0_19 = arith.constant 0 : index
    %53 = vector.load %arg4[%c0_18, %c8, %c0_19] : memref<1x32x8xbf16, #tpu.memory_space<vmem>>, vector<1x8x8xbf16>
    %54 = vector.shape_cast %53 : vector<1x8x8xbf16> to vector<8x8xbf16>
    %55 = vector.shape_cast %52 : vector<8x8xbf16> to vector<1x8x8xbf16>
    tpu.vector_store %arg4[%c0_18, %c8, %c0_19], %55 {strides = array<i32>} : memref<1x32x8xbf16, #tpu.memory_space<vmem>>, vector<1x8x8xbf16>,
    %56 = vector.extract_strided_slice %5 {offsets = [16, 0], sizes = [8, 8], strides = [1, 1]} : vector<32x8xbf16> to vector<8x8xbf16>
    %57 = vector.extract_strided_slice %7 {offsets = [16, 0], sizes = [8, 8], strides = [1, 1]} : vector<32x8xbf16> to vector<8x8xbf16>
    %58 = vector.extract_strided_slice %9 {offsets = [16, 0], sizes = [8, 8], strides = [1, 1]} : vector<32x8xbf16> to vector<8x8xbf16>
    "tpu.trace_start"() <{level = 10 : i32, message = "qd,kd->qk"}> : () -> ()
    %cst_20 = arith.constant dense<0.000000e+00> : vector<8x8xf32>
    %59 = tpu.matmul %56, %57, %cst_20 {dimension_numbers = #tpu.dot_dimension_numbers<[1], [1], [0], [0], [0, 0, 1, 0], [], []>} : vector<8x8xbf16>, vector<8x8xbf16>, vector<8x8xf32> -> vector<8x8xf32>
    "tpu.trace_stop"() : () -> ()
    %60 = vector.broadcast %11 : vector<1x8xf32> to vector<8x8xf32>
    %61 = arith.addf %59, %60 : vector<8x8xf32>
    %cst_21 = arith.constant dense<0xFF800000> : vector<8xf32>
    %62 = vector.multi_reduction <maximumf>, %61, %cst_21 [1] : vector<8x8xf32> to vector<8xf32>
    %63 = vector.shape_cast %62 : vector<8xf32> to vector<8x1xf32>
    %64 = vector.broadcast %63 : vector<8x1xf32> to vector<8x8xf32>
    %65 = arith.subf %61, %64 : vector<8x8xf32>
    %66 = math.exp %65 : vector<8x8xf32>
    %cst_22 = arith.constant dense<0.000000e+00> : vector<8xf32>
    %67 = vector.multi_reduction <add>, %66, %cst_22 [1] : vector<8x8xf32> to vector<8xf32>
    %68 = vector.shape_cast %67 : vector<8xf32> to vector<8x1xf32>
    %69 = tpu.reciprocal %68 {approx = true} : vector<8x1xf32> -> vector<8x1xf32>
    %70 = vector.broadcast %69 : vector<8x1xf32> to vector<8x8xf32>
    %71 = arith.mulf %66, %70 : vector<8x8xf32>
    %72 = arith.truncf %71 : vector<8x8xf32> to vector<8x8xbf16>
    %cst_23 = arith.constant dense<0.000000e+00> : vector<8x8xf32>
    %73 = tpu.matmul %72, %58, %cst_23 {dimension_numbers = #tpu.dot_dimension_numbers<[1], [0], [0], [1], [0, 0, 1, 1], [], []>} : vector<8x8xbf16>, vector<8x8xbf16>, vector<8x8xf32> -> vector<8x8xf32>
    %74 = arith.truncf %73 : vector<8x8xf32> to vector<8x8xbf16>
    %c0_24 = arith.constant 0 : index
    %c16 = arith.constant 16 : index
    %c0_25 = arith.constant 0 : index
    %75 = vector.load %arg4[%c0_24, %c16, %c0_25] : memref<1x32x8xbf16, #tpu.memory_space<vmem>>, vector<1x8x8xbf16>
    %76 = vector.shape_cast %75 : vector<1x8x8xbf16> to vector<8x8xbf16>
    %77 = vector.shape_cast %74 : vector<8x8xbf16> to vector<1x8x8xbf16>
    tpu.vector_store %arg4[%c0_24, %c16, %c0_25], %77 {strides = array<i32>} : memref<1x32x8xbf16, #tpu.memory_space<vmem>>, vector<1x8x8xbf16>,
    %78 = vector.extract_strided_slice %5 {offsets = [24, 0], sizes = [8, 8], strides = [1, 1]} : vector<32x8xbf16> to vector<8x8xbf16>
    %79 = vector.extract_strided_slice %7 {offsets = [24, 0], sizes = [8, 8], strides = [1, 1]} : vector<32x8xbf16> to vector<8x8xbf16>
    %80 = vector.extract_strided_slice %9 {offsets = [24, 0], sizes = [8, 8], strides = [1, 1]} : vector<32x8xbf16> to vector<8x8xbf16>
    "tpu.trace_start"() <{level = 10 : i32, message = "qd,kd->qk"}> : () -> ()
    %cst_26 = arith.constant dense<0.000000e+00> : vector<8x8xf32>
    %81 = tpu.matmul %78, %79, %cst_26 {dimension_numbers = #tpu.dot_dimension_numbers<[1], [1], [0], [0], [0, 0, 1, 0], [], []>} : vector<8x8xbf16>, vector<8x8xbf16>, vector<8x8xf32> -> vector<8x8xf32>
    "tpu.trace_stop"() : () -> ()
    %82 = vector.broadcast %11 : vector<1x8xf32> to vector<8x8xf32>
    %83 = arith.addf %81, %82 : vector<8x8xf32>
    %cst_27 = arith.constant dense<0xFF800000> : vector<8xf32>
    %84 = vector.multi_reduction <maximumf>, %83, %cst_27 [1] : vector<8x8xf32> to vector<8xf32>
    %85 = vector.shape_cast %84 : vector<8xf32> to vector<8x1xf32>
    %86 = vector.broadcast %85 : vector<8x1xf32> to vector<8x8xf32>
    %87 = arith.subf %83, %86 : vector<8x8xf32>
    %88 = math.exp %87 : vector<8x8xf32>
    %cst_28 = arith.constant dense<0.000000e+00> : vector<8xf32>
    %89 = vector.multi_reduction <add>, %88, %cst_28 [1] : vector<8x8xf32> to vector<8xf32>
    %90 = vector.shape_cast %89 : vector<8xf32> to vector<8x1xf32>
    %91 = tpu.reciprocal %90 {approx = true} : vector<8x1xf32> -> vector<8x1xf32>
    %92 = vector.broadcast %91 : vector<8x1xf32> to vector<8x8xf32>
    %93 = arith.mulf %88, %92 : vector<8x8xf32>
    %94 = arith.truncf %93 : vector<8x8xf32> to vector<8x8xbf16>
    %cst_29 = arith.constant dense<0.000000e+00> : vector<8x8xf32>
    %95 = tpu.matmul %94, %80, %cst_29 {dimension_numbers = #tpu.dot_dimension_numbers<[1], [0], [0], [1], [0, 0, 1, 1], [], []>} : vector<8x8xbf16>, vector<8x8xbf16>, vector<8x8xf32> -> vector<8x8xf32>
    %96 = arith.truncf %95 : vector<8x8xf32> to vector<8x8xbf16>
    %c0_30 = arith.constant 0 : index
    %c24 = arith.constant 24 : index
    %c0_31 = arith.constant 0 : index
    %97 = vector.load %arg4[%c0_30, %c24, %c0_31] : memref<1x32x8xbf16, #tpu.memory_space<vmem>>, vector<1x8x8xbf16>
    %98 = vector.shape_cast %97 : vector<1x8x8xbf16> to vector<8x8xbf16>
    %99 = vector.shape_cast %96 : vector<8x8xbf16> to vector<1x8x8xbf16>
    tpu.vector_store %arg4[%c0_30, %c24, %c0_31], %99 {strides = array<i32>} : memref<1x32x8xbf16, #tpu.memory_space<vmem>>, vector<1x8x8xbf16>,
    return
  }
  func.func @transform_0(%arg0: i32) -> (i32, i32, i32) {
    %c0_i32 = arith.constant 0 : i32
    %c0_i32_0 = arith.constant 0 : i32
    %c0_i32_1 = arith.constant 0 : i32
    return %arg0, %c0_i32, %c0_i32_0 : i32, i32, i32
  }
  func.func @transform_1(%arg0: i32) -> (i32, i32, i32) {
    %c0_i32 = arith.constant 0 : i32
    %c0_i32_0 = arith.constant 0 : i32
    %c0_i32_1 = arith.constant 0 : i32
    return %arg0, %c0_i32, %c0_i32_0 : i32, i32, i32
  }
  func.func @transform_2(%arg0: i32) -> (i32, i32) {
    %c0_i32 = arith.constant 0 : i32
    %c0_i32_0 = arith.constant 0 : i32
    %c0_i32_1 = arith.constant 0 : i32
    return %c0_i32, %c0_i32_0 : i32, i32
  }
  func.func @transform_3(%arg0: i32) -> (i32, i32, i32) {
    %c0_i32 = arith.constant 0 : i32
    %c0_i32_0 = arith.constant 0 : i32
    %c0_i32_1 = arith.constant 0 : i32
    return %arg0, %c0_i32, %c0_i32_0 : i32, i32, i32
  }
}

module attributes {stable_mosaic.version = 11 : i64} {
  func.func @_block_tail_kernel(%arg0: i32, %arg1: i32, %arg2: memref<16x32xbf16, #tpu.memory_space<vmem>>, %arg3: memref<16x32xbf16, #tpu.memory_space<vmem>>, %arg4: memref<32x32xbf16, #tpu.memory_space<vmem>>, %arg5: memref<1x32xf32, #tpu.memory_space<vmem>>, %arg6: memref<1x32xf32, #tpu.memory_space<vmem>>, %arg7: memref<1x32xf32, #tpu.memory_space<vmem>>, %arg8: memref<32x128xbf16, #tpu.memory_space<vmem>>, %arg9: memref<1x128xf32, #tpu.memory_space<vmem>>, %arg10: memref<128x32xbf16, #tpu.memory_space<vmem>>, %arg11: memref<1x32xf32, #tpu.memory_space<vmem>>, %arg12: memref<1x32xf32, #tpu.memory_space<vmem>>, %arg13: memref<1x32xf32, #tpu.memory_space<vmem>>, %arg14: memref<16x32xbf16, #tpu.memory_space<vmem>>, %arg15: memref<16x32xf32, #tpu.memory_space<vmem>>, %arg16: memref<16x32xf32, #tpu.memory_space<vmem>>) attributes {dimension_semantics = [#tpu.dimension_semantics<parallel>, #tpu.dimension_semantics<arbitrary>], iteration_bounds = array<i64: 1, 1>, scalar_prefetch = 0 : i64, scratch_operands = 2 : i64, tpu.core_type = #tpu.core_type<tc>, window_params = [{transform_indices = @transform_0, window_bounds = array<i64: 16, 32>}, {transform_indices = @transform_1, window_bounds = array<i64: 16, 32>}, {pipeline_mode = #tpu.pipeline_mode<synchronous>, transform_indices = @transform_2, window_bounds = array<i64: 32, 32>}, {pipeline_mode = #tpu.pipeline_mode<synchronous>, transform_indices = @transform_3, window_bounds = array<i64: 1, 32>}, {pipeline_mode = #tpu.pipeline_mode<synchronous>, transform_indices = @transform_4, window_bounds = array<i64: 1, 32>}, {pipeline_mode = #tpu.pipeline_mode<synchronous>, transform_indices = @transform_5, window_bounds = array<i64: 1, 32>}, {transform_indices = @transform_6, window_bounds = array<i64: 32, 128>}, {transform_indices = @transform_7, window_bounds = array<i64: 1, 128>}, {transform_indices = @transform_8, window_bounds = array<i64: 128, 32>}, {pipeline_mode = #tpu.pipeline_mode<synchronous>, transform_indices = @transform_9, window_bounds = array<i64: 1, 32>}, {pipeline_mode = #tpu.pipeline_mode<synchronous>, transform_indices = @transform_10, window_bounds = array<i64: 1, 32>}, {pipeline_mode = #tpu.pipeline_mode<synchronous>, transform_indices = @transform_11, window_bounds = array<i64: 1, 32>}, {transform_indices = @transform_12, window_bounds = array<i64: 16, 32>}]} {
    %c0_i32 = arith.constant 0 : i32
    %0 = arith.cmpi eq, %arg1, %c0_i32 : i32
    %1 = arith.extui %0 : i1 to i32
    %c0_i32_0 = arith.constant 0 : i32
    %2 = arith.cmpi ne, %1, %c0_i32_0 : i32
    scf.if %2 {
      %c0_16 = arith.constant 0 : index
      %c0_17 = arith.constant 0 : index
      %21 = vector.load %arg2[%c0_16, %c0_17] : memref<16x32xbf16, #tpu.memory_space<vmem>>, vector<16x32xbf16>
      %c0_18 = arith.constant 0 : index
      %c0_19 = arith.constant 0 : index
      %22 = vector.load %arg4[%c0_18, %c0_19] : memref<32x32xbf16, #tpu.memory_space<vmem>>, vector<32x32xbf16>
      %cst_20 = arith.constant dense<0.000000e+00> : vector<16x32xf32>
      %23 = tpu.matmul %21, %22, %cst_20 {dimension_numbers = #tpu.dot_dimension_numbers<[1], [0], [0], [1], [0, 0, 1, 1], [], []>} : vector<16x32xbf16>, vector<32x32xbf16>, vector<16x32xf32> -> vector<16x32xf32>
      %c0_21 = arith.constant 0 : index
      %c0_22 = arith.constant 0 : index
      %24 = vector.load %arg5[%c0_21, %c0_22] : memref<1x32xf32, #tpu.memory_space<vmem>>, vector<1x32xf32>
      %25 = vector.broadcast %24 : vector<1x32xf32> to vector<16x32xf32>
      %26 = arith.addf %23, %25 : vector<16x32xf32>
      %c0_23 = arith.constant 0 : index
      %c0_24 = arith.constant 0 : index
      %27 = vector.load %arg3[%c0_23, %c0_24] : memref<16x32xbf16, #tpu.memory_space<vmem>>, vector<16x32xbf16>
      %28 = arith.extf %27 : vector<16x32xbf16> to vector<16x32xf32>
      %29 = arith.addf %26, %28 : vector<16x32xf32>
      %cst_25 = arith.constant dense<0.000000e+00> : vector<16xf32>
      %30 = vector.multi_reduction <add>, %29, %cst_25 [1] : vector<16x32xf32> to vector<16xf32>
      %31 = vector.shape_cast %30 : vector<16xf32> to vector<16x1xf32>
      %cst_26 = arith.constant 3.200000e+01 : f32
      %32 = vector.broadcast %cst_26 : f32 to vector<16x1xf32>
      %33 = arith.divf %31, %32 : vector<16x1xf32>
      %34 = vector.broadcast %33 : vector<16x1xf32> to vector<16x32xf32>
      %35 = arith.subf %29, %34 : vector<16x32xf32>
      %36 = arith.mulf %35, %35 : vector<16x32xf32>
      %cst_27 = arith.constant dense<0.000000e+00> : vector<16xf32>
      %37 = vector.multi_reduction <add>, %36, %cst_27 [1] : vector<16x32xf32> to vector<16xf32>
      %38 = vector.shape_cast %37 : vector<16xf32> to vector<16x1xf32>
      %cst_28 = arith.constant 3.200000e+01 : f32
      %39 = vector.broadcast %cst_28 : f32 to vector<16x1xf32>
      %40 = arith.divf %38, %39 : vector<16x1xf32>
      %41 = vector.broadcast %33 : vector<16x1xf32> to vector<16x32xf32>
      %42 = arith.subf %29, %41 : vector<16x32xf32>
      %cst_29 = arith.constant 9.99999974E-6 : f32
      %43 = vector.broadcast %cst_29 : f32 to vector<16x1xf32>
      %44 = arith.addf %40, %43 : vector<16x1xf32>
      %45 = math.rsqrt %44 : vector<16x1xf32>
      %46 = vector.broadcast %45 : vector<16x1xf32> to vector<16x32xf32>
      %47 = arith.mulf %42, %46 : vector<16x32xf32>
      %c0_30 = arith.constant 0 : index
      %c0_31 = arith.constant 0 : index
      %48 = vector.load %arg6[%c0_30, %c0_31] : memref<1x32xf32, #tpu.memory_space<vmem>>, vector<1x32xf32>
      %49 = vector.broadcast %48 : vector<1x32xf32> to vector<16x32xf32>
      %50 = arith.mulf %47, %49 : vector<16x32xf32>
      %c0_32 = arith.constant 0 : index
      %c0_33 = arith.constant 0 : index
      %51 = vector.load %arg7[%c0_32, %c0_33] : memref<1x32xf32, #tpu.memory_space<vmem>>, vector<1x32xf32>
      %52 = vector.broadcast %51 : vector<1x32xf32> to vector<16x32xf32>
      %53 = arith.addf %50, %52 : vector<16x32xf32>
      %c0_34 = arith.constant 0 : index
      %c0_35 = arith.constant 0 : index
      %54 = vector.load %arg15[%c0_34, %c0_35] : memref<16x32xf32, #tpu.memory_space<vmem>>, vector<16x32xf32>
      tpu.vector_store %arg15[%c0_34, %c0_35], %53 {strides = array<i32>} : memref<16x32xf32, #tpu.memory_space<vmem>>, vector<16x32xf32>,
      %cst_36 = arith.constant 0.000000e+00 : f32
      %55 = vector.broadcast %cst_36 : f32 to vector<16x32xf32>
      %c0_37 = arith.constant 0 : index
      %c0_38 = arith.constant 0 : index
      %56 = vector.load %arg16[%c0_37, %c0_38] : memref<16x32xf32, #tpu.memory_space<vmem>>, vector<16x32xf32>
      tpu.vector_store %arg16[%c0_37, %c0_38], %55 {strides = array<i32>} : memref<16x32xf32, #tpu.memory_space<vmem>>, vector<16x32xf32>,
    } else {
    }
    %c0 = arith.constant 0 : index
    %c0_1 = arith.constant 0 : index
    %3 = vector.load %arg15[%c0, %c0_1] : memref<16x32xf32, #tpu.memory_space<vmem>>, vector<16x32xf32>
    %4 = arith.truncf %3 : vector<16x32xf32> to vector<16x32xbf16>
    %c0_2 = arith.constant 0 : index
    %c0_3 = arith.constant 0 : index
    %5 = vector.load %arg8[%c0_2, %c0_3] : memref<32x128xbf16, #tpu.memory_space<vmem>>, vector<32x128xbf16>
    %cst = arith.constant dense<0.000000e+00> : vector<16x128xf32>
    %6 = tpu.matmul %4, %5, %cst {dimension_numbers = #tpu.dot_dimension_numbers<[1], [0], [0], [1], [0, 0, 1, 1], [], []>} : vector<16x32xbf16>, vector<32x128xbf16>, vector<16x128xf32> -> vector<16x128xf32>
    %c0_4 = arith.constant 0 : index
    %c0_5 = arith.constant 0 : index
    %7 = vector.load %arg9[%c0_4, %c0_5] : memref<1x128xf32, #tpu.memory_space<vmem>>, vector<1x128xf32>
    %8 = vector.broadcast %7 : vector<1x128xf32> to vector<16x128xf32>
    %9 = arith.addf %6, %8 : vector<16x128xf32>
    %cst_6 = arith.constant 0.000000e+00 : f32
    %10 = vector.broadcast %cst_6 : f32 to vector<16x128xf32>
    %11 = arith.maximumf %9, %10 : vector<16x128xf32>
    %12 = arith.truncf %11 : vector<16x128xf32> to vector<16x128xbf16>
    %c0_7 = arith.constant 0 : index
    %c0_8 = arith.constant 0 : index
    %13 = vector.load %arg16[%c0_7, %c0_8] : memref<16x32xf32, #tpu.memory_space<vmem>>, vector<16x32xf32>
    %c0_9 = arith.constant 0 : index
    %c0_10 = arith.constant 0 : index
    %14 = vector.load %arg10[%c0_9, %c0_10] : memref<128x32xbf16, #tpu.memory_space<vmem>>, vector<128x32xbf16>
    %cst_11 = arith.constant dense<0.000000e+00> : vector<16x32xf32>
    %15 = tpu.matmul %12, %14, %cst_11 {dimension_numbers = #tpu.dot_dimension_numbers<[1], [0], [0], [1], [0, 0, 1, 1], [], []>} : vector<16x128xbf16>, vector<128x32xbf16>, vector<16x32xf32> -> vector<16x32xf32>
    %16 = arith.addf %13, %15 : vector<16x32xf32>
    %c0_12 = arith.constant 0 : index
    %c0_13 = arith.constant 0 : index
    %17 = vector.load %arg16[%c0_12, %c0_13] : memref<16x32xf32, #tpu.memory_space<vmem>>, vector<16x32xf32>
    tpu.vector_store %arg16[%c0_12, %c0_13], %16 {strides = array<i32>} : memref<16x32xf32, #tpu.memory_space<vmem>>, vector<16x32xf32>,
    %c0_i32_14 = arith.constant 0 : i32
    %18 = arith.cmpi eq, %arg1, %c0_i32_14 : i32
    %19 = arith.extui %18 : i1 to i32
    %c0_i32_15 = arith.constant 0 : i32
    %20 = arith.cmpi ne, %19, %c0_i32_15 : i32
    scf.if %20 {
      %c0_16 = arith.constant 0 : index
      %c0_17 = arith.constant 0 : index
      %21 = vector.load %arg16[%c0_16, %c0_17] : memref<16x32xf32, #tpu.memory_space<vmem>>, vector<16x32xf32>
      %c0_18 = arith.constant 0 : index
      %c0_19 = arith.constant 0 : index
      %22 = vector.load %arg11[%c0_18, %c0_19] : memref<1x32xf32, #tpu.memory_space<vmem>>, vector<1x32xf32>
      %23 = vector.broadcast %22 : vector<1x32xf32> to vector<16x32xf32>
      %24 = arith.addf %21, %23 : vector<16x32xf32>
      %c0_20 = arith.constant 0 : index
      %c0_21 = arith.constant 0 : index
      %25 = vector.load %arg15[%c0_20, %c0_21] : memref<16x32xf32, #tpu.memory_space<vmem>>, vector<16x32xf32>
      %26 = arith.addf %24, %25 : vector<16x32xf32>
      %cst_22 = arith.constant dense<0.000000e+00> : vector<16xf32>
      %27 = vector.multi_reduction <add>, %26, %cst_22 [1] : vector<16x32xf32> to vector<16xf32>
      %28 = vector.shape_cast %27 : vector<16xf32> to vector<16x1xf32>
      %cst_23 = arith.constant 3.200000e+01 : f32
      %29 = vector.broadcast %cst_23 : f32 to vector<16x1xf32>
      %30 = arith.divf %28, %29 : vector<16x1xf32>
      %31 = vector.broadcast %30 : vector<16x1xf32> to vector<16x32xf32>
      %32 = arith.subf %26, %31 : vector<16x32xf32>
      %33 = arith.mulf %32, %32 : vector<16x32xf32>
      %cst_24 = arith.constant dense<0.000000e+00> : vector<16xf32>
      %34 = vector.multi_reduction <add>, %33, %cst_24 [1] : vector<16x32xf32> to vector<16xf32>
      %35 = vector.shape_cast %34 : vector<16xf32> to vector<16x1xf32>
      %cst_25 = arith.constant 3.200000e+01 : f32
      %36 = vector.broadcast %cst_25 : f32 to vector<16x1xf32>
      %37 = arith.divf %35, %36 : vector<16x1xf32>
      %38 = vector.broadcast %30 : vector<16x1xf32> to vector<16x32xf32>
      %39 = arith.subf %26, %38 : vector<16x32xf32>
      %cst_26 = arith.constant 9.99999974E-6 : f32
      %40 = vector.broadcast %cst_26 : f32 to vector<16x1xf32>
      %41 = arith.addf %37, %40 : vector<16x1xf32>
      %42 = math.rsqrt %41 : vector<16x1xf32>
      %43 = vector.broadcast %42 : vector<16x1xf32> to vector<16x32xf32>
      %44 = arith.mulf %39, %43 : vector<16x32xf32>
      %c0_27 = arith.constant 0 : index
      %c0_28 = arith.constant 0 : index
      %45 = vector.load %arg12[%c0_27, %c0_28] : memref<1x32xf32, #tpu.memory_space<vmem>>, vector<1x32xf32>
      %46 = vector.broadcast %45 : vector<1x32xf32> to vector<16x32xf32>
      %47 = arith.mulf %44, %46 : vector<16x32xf32>
      %c0_29 = arith.constant 0 : index
      %c0_30 = arith.constant 0 : index
      %48 = vector.load %arg13[%c0_29, %c0_30] : memref<1x32xf32, #tpu.memory_space<vmem>>, vector<1x32xf32>
      %49 = vector.broadcast %48 : vector<1x32xf32> to vector<16x32xf32>
      %50 = arith.addf %47, %49 : vector<16x32xf32>
      %51 = arith.truncf %50 : vector<16x32xf32> to vector<16x32xbf16>
      %c0_31 = arith.constant 0 : index
      %c0_32 = arith.constant 0 : index
      %52 = vector.load %arg14[%c0_31, %c0_32] : memref<16x32xbf16, #tpu.memory_space<vmem>>, vector<16x32xbf16>
      tpu.vector_store %arg14[%c0_31, %c0_32], %51 {strides = array<i32>} : memref<16x32xbf16, #tpu.memory_space<vmem>>, vector<16x32xbf16>,
    } else {
    }
    return
  }
  func.func @transform_0(%arg0: i32, %arg1: i32) -> (i32, i32) {
    %c0_i32 = arith.constant 0 : i32
    %c0_i32_0 = arith.constant 0 : i32
    return %arg0, %c0_i32 : i32, i32
  }
  func.func @transform_1(%arg0: i32, %arg1: i32) -> (i32, i32) {
    %c0_i32 = arith.constant 0 : i32
    %c0_i32_0 = arith.constant 0 : i32
    return %arg0, %c0_i32 : i32, i32
  }
  func.func @transform_2(%arg0: i32, %arg1: i32) -> (i32, i32) {
    %c0_i32 = arith.constant 0 : i32
    %c0_i32_0 = arith.constant 0 : i32
    %c0_i32_1 = arith.constant 0 : i32
    return %c0_i32, %c0_i32_0 : i32, i32
  }
  func.func @transform_3(%arg0: i32, %arg1: i32) -> (i32, i32) {
    %c0_i32 = arith.constant 0 : i32
    %c0_i32_0 = arith.constant 0 : i32
    %c0_i32_1 = arith.constant 0 : i32
    return %c0_i32, %c0_i32_0 : i32, i32
  }
  func.func @transform_4(%arg0: i32, %arg1: i32) -> (i32, i32) {
    %c0_i32 = arith.constant 0 : i32
    %c0_i32_0 = arith.constant 0 : i32
    %c0_i32_1 = arith.constant 0 : i32
    return %c0_i32, %c0_i32_0 : i32, i32
  }
  func.func @transform_5(%arg0: i32, %arg1: i32) -> (i32, i32) {
    %c0_i32 = arith.constant 0 : i32
    %c0_i32_0 = arith.constant 0 : i32
    %c0_i32_1 = arith.constant 0 : i32
    return %c0_i32, %c0_i32_0 : i32, i32
  }
  func.func @transform_6(%arg0: i32, %arg1: i32) -> (i32, i32) {
    %c0_i32 = arith.constant 0 : i32
    %c0_i32_0 = arith.constant 0 : i32
    return %c0_i32, %arg1 : i32, i32
  }
  func.func @transform_7(%arg0: i32, %arg1: i32) -> (i32, i32) {
    %c0_i32 = arith.constant 0 : i32
    %c0_i32_0 = arith.constant 0 : i32
    return %c0_i32, %arg1 : i32, i32
  }
  func.func @transform_8(%arg0: i32, %arg1: i32) -> (i32, i32) {
    %c0_i32 = arith.constant 0 : i32
    %c0_i32_0 = arith.constant 0 : i32
    return %arg1, %c0_i32 : i32, i32
  }
  func.func @transform_9(%arg0: i32, %arg1: i32) -> (i32, i32) {
    %c0_i32 = arith.constant 0 : i32
    %c0_i32_0 = arith.constant 0 : i32
    %c0_i32_1 = arith.constant 0 : i32
    return %c0_i32, %c0_i32_0 : i32, i32
  }
  func.func @transform_10(%arg0: i32, %arg1: i32) -> (i32, i32) {
    %c0_i32 = arith.constant 0 : i32
    %c0_i32_0 = arith.constant 0 : i32
    %c0_i32_1 = arith.constant 0 : i32
    return %c0_i32, %c0_i32_0 : i32, i32
  }
  func.func @transform_11(%arg0: i32, %arg1: i32) -> (i32, i32) {
    %c0_i32 = arith.constant 0 : i32
    %c0_i32_0 = arith.constant 0 : i32
    %c0_i32_1 = arith.constant 0 : i32
    return %c0_i32, %c0_i32_0 : i32, i32
  }
  func.func @transform_12(%arg0: i32, %arg1: i32) -> (i32, i32) {
    %c0_i32 = arith.constant 0 : i32
    %c0_i32_0 = arith.constant 0 : i32
    return %arg0, %c0_i32 : i32, i32
  }
}

module attributes {stable_mosaic.version = 11 : i64} {
  func.func @_block_tail_kernel(%arg0: i32, %arg1: i32, %arg2: memref<16x32xbf16, #tpu.memory_space<vmem>>, %arg3: memref<16x32xbf16, #tpu.memory_space<vmem>>, %arg4: memref<32x32xbf16, #tpu.memory_space<vmem>>, %arg5: memref<1x32xf32, #tpu.memory_space<vmem>>, %arg6: memref<1x32xf32, #tpu.memory_space<vmem>>, %arg7: memref<1x32xf32, #tpu.memory_space<vmem>>, %arg8: memref<32x128xbf16, #tpu.memory_space<vmem>>, %arg9: memref<1x128xf32, #tpu.memory_space<vmem>>, %arg10: memref<128x32xbf16, #tpu.memory_space<vmem>>, %arg11: memref<1x32xf32, #tpu.memory_space<vmem>>, %arg12: memref<1x32xf32, #tpu.memory_space<vmem>>, %arg13: memref<1x32xf32, #tpu.memory_space<vmem>>, %arg14: memref<16x32xbf16, #tpu.memory_space<vmem>>, %arg15: memref<16x32xf32, #tpu.memory_space<vmem>>, %arg16: memref<16x32xf32, #tpu.memory_space<vmem>>) attributes {dimension_semantics = [#tpu.dimension_semantics<parallel>, #tpu.dimension_semantics<arbitrary>], iteration_bounds = array<i64: 1, 1>, scalar_prefetch = 0 : i64, scratch_operands = 2 : i64, tpu.core_type = #tpu.core_type<tc>, window_params = [{transform_indices = @transform_0, window_bounds = array<i64: 16, 32>}, {transform_indices = @transform_1, window_bounds = array<i64: 16, 32>}, {pipeline_mode = #tpu.pipeline_mode<synchronous>, transform_indices = @transform_2, window_bounds = array<i64: 32, 32>}, {pipeline_mode = #tpu.pipeline_mode<synchronous>, transform_indices = @transform_3, window_bounds = array<i64: 1, 32>}, {pipeline_mode = #tpu.pipeline_mode<synchronous>, transform_indices = @transform_4, window_bounds = array<i64: 1, 32>}, {pipeline_mode = #tpu.pipeline_mode<synchronous>, transform_indices = @transform_5, window_bounds = array<i64: 1, 32>}, {transform_indices = @transform_6, window_bounds = array<i64: 32, 128>}, {transform_indices = @transform_7, window_bounds = array<i64: 1, 128>}, {transform_indices = @transform_8, window_bounds = array<i64: 128, 32>}, {pipeline_mode = #tpu.pipeline_mode<synchronous>, transform_indices = @transform_9, window_bounds = array<i64: 1, 32>}, {pipeline_mode = #tpu.pipeline_mode<synchronous>, transform_indices = @transform_10, window_bounds = array<i64: 1, 32>}, {pipeline_mode = #tpu.pipeline_mode<synchronous>, transform_indices = @transform_11, window_bounds = array<i64: 1, 32>}, {transform_indices = @transform_12, window_bounds = array<i64: 16, 32>}]} {
    %c0_i32 = arith.constant 0 : i32
    %0 = arith.cmpi eq, %arg1, %c0_i32 : i32
    %1 = arith.extui %0 : i1 to i32
    %c0_i32_0 = arith.constant 0 : i32
    %2 = arith.cmpi ne, %1, %c0_i32_0 : i32
    scf.if %2 {
      %c0_16 = arith.constant 0 : index
      %c0_17 = arith.constant 0 : index
      %21 = vector.load %arg2[%c0_16, %c0_17] : memref<16x32xbf16, #tpu.memory_space<vmem>>, vector<16x32xbf16>
      %c0_18 = arith.constant 0 : index
      %c0_19 = arith.constant 0 : index
      %22 = vector.load %arg4[%c0_18, %c0_19] : memref<32x32xbf16, #tpu.memory_space<vmem>>, vector<32x32xbf16>
      %cst_20 = arith.constant dense<0.000000e+00> : vector<16x32xf32>
      %23 = tpu.matmul %21, %22, %cst_20 {dimension_numbers = #tpu.dot_dimension_numbers<[1], [0], [0], [1], [0, 0, 1, 1], [], []>} : vector<16x32xbf16>, vector<32x32xbf16>, vector<16x32xf32> -> vector<16x32xf32>
      %c0_21 = arith.constant 0 : index
      %c0_22 = arith.constant 0 : index
      %24 = vector.load %arg5[%c0_21, %c0_22] : memref<1x32xf32, #tpu.memory_space<vmem>>, vector<1x32xf32>
      %25 = vector.broadcast %24 : vector<1x32xf32> to vector<16x32xf32>
      %26 = arith.addf %23, %25 : vector<16x32xf32>
      %c0_23 = arith.constant 0 : index
      %c0_24 = arith.constant 0 : index
      %27 = vector.load %arg3[%c0_23, %c0_24] : memref<16x32xbf16, #tpu.memory_space<vmem>>, vector<16x32xbf16>
      %28 = arith.extf %27 : vector<16x32xbf16> to vector<16x32xf32>
      %29 = arith.addf %26, %28 : vector<16x32xf32>
      %cst_25 = arith.constant dense<0.000000e+00> : vector<16xf32>
      %30 = vector.multi_reduction <add>, %29, %cst_25 [1] : vector<16x32xf32> to vector<16xf32>
      %31 = vector.shape_cast %30 : vector<16xf32> to vector<16x1xf32>
      %cst_26 = arith.constant 3.200000e+01 : f32
      %32 = vector.broadcast %cst_26 : f32 to vector<16x1xf32>
      %33 = arith.divf %31, %32 : vector<16x1xf32>
      %34 = vector.broadcast %33 : vector<16x1xf32> to vector<16x32xf32>
      %35 = arith.subf %29, %34 : vector<16x32xf32>
      %36 = arith.mulf %35, %35 : vector<16x32xf32>
      %cst_27 = arith.constant dense<0.000000e+00> : vector<16xf32>
      %37 = vector.multi_reduction <add>, %36, %cst_27 [1] : vector<16x32xf32> to vector<16xf32>
      %38 = vector.shape_cast %37 : vector<16xf32> to vector<16x1xf32>
      %cst_28 = arith.constant 3.200000e+01 : f32
      %39 = vector.broadcast %cst_28 : f32 to vector<16x1xf32>
      %40 = arith.divf %38, %39 : vector<16x1xf32>
      %41 = vector.broadcast %33 : vector<16x1xf32> to vector<16x32xf32>
      %42 = arith.subf %29, %41 : vector<16x32xf32>
      %cst_29 = arith.constant 9.99999974E-6 : f32
      %43 = vector.broadcast %cst_29 : f32 to vector<16x1xf32>
      %44 = arith.addf %40, %43 : vector<16x1xf32>
      %45 = math.rsqrt %44 : vector<16x1xf32>
      %46 = vector.broadcast %45 : vector<16x1xf32> to vector<16x32xf32>
      %47 = arith.mulf %42, %46 : vector<16x32xf32>
      %c0_30 = arith.constant 0 : index
      %c0_31 = arith.constant 0 : index
      %48 = vector.load %arg6[%c0_30, %c0_31] : memref<1x32xf32, #tpu.memory_space<vmem>>, vector<1x32xf32>
      %49 = vector.broadcast %48 : vector<1x32xf32> to vector<16x32xf32>
      %50 = arith.mulf %47, %49 : vector<16x32xf32>
      %c0_32 = arith.constant 0 : index
      %c0_33 = arith.constant 0 : index
      %51 = vector.load %arg7[%c0_32, %c0_33] : memref<1x32xf32, #tpu.memory_space<vmem>>, vector<1x32xf32>
      %52 = vector.broadcast %51 : vector<1x32xf32> to vector<16x32xf32>
      %53 = arith.addf %50, %52 : vector<16x32xf32>
      %c0_34 = arith.constant 0 : index
      %c0_35 = arith.constant 0 : index
      %54 = vector.load %arg15[%c0_34, %c0_35] : memref<16x32xf32, #tpu.memory_space<vmem>>, vector<16x32xf32>
      tpu.vector_store %arg15[%c0_34, %c0_35], %53 {strides = array<i32>} : memref<16x32xf32, #tpu.memory_space<vmem>>, vector<16x32xf32>,
      %cst_36 = arith.constant 0.000000e+00 : f32
      %55 = vector.broadcast %cst_36 : f32 to vector<16x32xf32>
      %c0_37 = arith.constant 0 : index
      %c0_38 = arith.constant 0 : index
      %56 = vector.load %arg16[%c0_37, %c0_38] : memref<16x32xf32, #tpu.memory_space<vmem>>, vector<16x32xf32>
      tpu.vector_store %arg16[%c0_37, %c0_38], %55 {strides = array<i32>} : memref<16x32xf32, #tpu.memory_space<vmem>>, vector<16x32xf32>,
    } else {
    }
    %c0 = arith.constant 0 : index
    %c0_1 = arith.constant 0 : index
    %3 = vector.load %arg15[%c0, %c0_1] : memref<16x32xf32, #tpu.memory_space<vmem>>, vector<16x32xf32>
    %4 = arith.truncf %3 : vector<16x32xf32> to vector<16x32xbf16>
    %c0_2 = arith.constant 0 : index
    %c0_3 = arith.constant 0 : index
    %5 = vector.load %arg8[%c0_2, %c0_3] : memref<32x128xbf16, #tpu.memory_space<vmem>>, vector<32x128xbf16>
    %cst = arith.constant dense<0.000000e+00> : vector<16x128xf32>
    %6 = tpu.matmul %4, %5, %cst {dimension_numbers = #tpu.dot_dimension_numbers<[1], [0], [0], [1], [0, 0, 1, 1], [], []>} : vector<16x32xbf16>, vector<32x128xbf16>, vector<16x128xf32> -> vector<16x128xf32>
    %c0_4 = arith.constant 0 : index
    %c0_5 = arith.constant 0 : index
    %7 = vector.load %arg9[%c0_4, %c0_5] : memref<1x128xf32, #tpu.memory_space<vmem>>, vector<1x128xf32>
    %8 = vector.broadcast %7 : vector<1x128xf32> to vector<16x128xf32>
    %9 = arith.addf %6, %8 : vector<16x128xf32>
    %cst_6 = arith.constant 0.000000e+00 : f32
    %10 = vector.broadcast %cst_6 : f32 to vector<16x128xf32>
    %11 = arith.maximumf %9, %10 : vector<16x128xf32>
    %12 = arith.truncf %11 : vector<16x128xf32> to vector<16x128xbf16>
    %c0_7 = arith.constant 0 : index
    %c0_8 = arith.constant 0 : index
    %13 = vector.load %arg16[%c0_7, %c0_8] : memref<16x32xf32, #tpu.memory_space<vmem>>, vector<16x32xf32>
    %c0_9 = arith.constant 0 : index
    %c0_10 = arith.constant 0 : index
    %14 = vector.load %arg10[%c0_9, %c0_10] : memref<128x32xbf16, #tpu.memory_space<vmem>>, vector<128x32xbf16>
    %cst_11 = arith.constant dense<0.000000e+00> : vector<16x32xf32>
    %15 = tpu.matmul %12, %14, %cst_11 {dimension_numbers = #tpu.dot_dimension_numbers<[1], [0], [0], [1], [0, 0, 1, 1], [], []>} : vector<16x128xbf16>, vector<128x32xbf16>, vector<16x32xf32> -> vector<16x32xf32>
    %16 = arith.addf %13, %15 : vector<16x32xf32>
    %c0_12 = arith.constant 0 : index
    %c0_13 = arith.constant 0 : index
    %17 = vector.load %arg16[%c0_12, %c0_13] : memref<16x32xf32, #tpu.memory_space<vmem>>, vector<16x32xf32>
    tpu.vector_store %arg16[%c0_12, %c0_13], %16 {strides = array<i32>} : memref<16x32xf32, #tpu.memory_space<vmem>>, vector<16x32xf32>,
    %c0_i32_14 = arith.constant 0 : i32
    %18 = arith.cmpi eq, %arg1, %c0_i32_14 : i32
    %19 = arith.extui %18 : i1 to i32
    %c0_i32_15 = arith.constant 0 : i32
    %20 = arith.cmpi ne, %19, %c0_i32_15 : i32
    scf.if %20 {
      %c0_16 = arith.constant 0 : index
      %c0_17 = arith.constant 0 : index
      %21 = vector.load %arg16[%c0_16, %c0_17] : memref<16x32xf32, #tpu.memory_space<vmem>>, vector<16x32xf32>
      %c0_18 = arith.constant 0 : index
      %c0_19 = arith.constant 0 : index
      %22 = vector.load %arg11[%c0_18, %c0_19] : memref<1x32xf32, #tpu.memory_space<vmem>>, vector<1x32xf32>
      %23 = vector.broadcast %22 : vector<1x32xf32> to vector<16x32xf32>
      %24 = arith.addf %21, %23 : vector<16x32xf32>
      %c0_20 = arith.constant 0 : index
      %c0_21 = arith.constant 0 : index
      %25 = vector.load %arg15[%c0_20, %c0_21] : memref<16x32xf32, #tpu.memory_space<vmem>>, vector<16x32xf32>
      %26 = arith.addf %24, %25 : vector<16x32xf32>
      %cst_22 = arith.constant dense<0.000000e+00> : vector<16xf32>
      %27 = vector.multi_reduction <add>, %26, %cst_22 [1] : vector<16x32xf32> to vector<16xf32>
      %28 = vector.shape_cast %27 : vector<16xf32> to vector<16x1xf32>
      %cst_23 = arith.constant 3.200000e+01 : f32
      %29 = vector.broadcast %cst_23 : f32 to vector<16x1xf32>
      %30 = arith.divf %28, %29 : vector<16x1xf32>
      %31 = vector.broadcast %30 : vector<16x1xf32> to vector<16x32xf32>
      %32 = arith.subf %26, %31 : vector<16x32xf32>
      %33 = arith.mulf %32, %32 : vector<16x32xf32>
      %cst_24 = arith.constant dense<0.000000e+00> : vector<16xf32>
      %34 = vector.multi_reduction <add>, %33, %cst_24 [1] : vector<16x32xf32> to vector<16xf32>
      %35 = vector.shape_cast %34 : vector<16xf32> to vector<16x1xf32>
      %cst_25 = arith.constant 3.200000e+01 : f32
      %36 = vector.broadcast %cst_25 : f32 to vector<16x1xf32>
      %37 = arith.divf %35, %36 : vector<16x1xf32>
      %38 = vector.broadcast %30 : vector<16x1xf32> to vector<16x32xf32>
      %39 = arith.subf %26, %38 : vector<16x32xf32>
      %cst_26 = arith.constant 9.99999974E-6 : f32
      %40 = vector.broadcast %cst_26 : f32 to vector<16x1xf32>
      %41 = arith.addf %37, %40 : vector<16x1xf32>
      %42 = math.rsqrt %41 : vector<16x1xf32>
      %43 = vector.broadcast %42 : vector<16x1xf32> to vector<16x32xf32>
      %44 = arith.mulf %39, %43 : vector<16x32xf32>
      %c0_27 = arith.constant 0 : index
      %c0_28 = arith.constant 0 : index
      %45 = vector.load %arg12[%c0_27, %c0_28] : memref<1x32xf32, #tpu.memory_space<vmem>>, vector<1x32xf32>
      %46 = vector.broadcast %45 : vector<1x32xf32> to vector<16x32xf32>
      %47 = arith.mulf %44, %46 : vector<16x32xf32>
      %c0_29 = arith.constant 0 : index
      %c0_30 = arith.constant 0 : index
      %48 = vector.load %arg13[%c0_29, %c0_30] : memref<1x32xf32, #tpu.memory_space<vmem>>, vector<1x32xf32>
      %49 = vector.broadcast %48 : vector<1x32xf32> to vector<16x32xf32>
      %50 = arith.addf %47, %49 : vector<16x32xf32>
      %51 = arith.truncf %50 : vector<16x32xf32> to vector<16x32xbf16>
      %c0_31 = arith.constant 0 : index
      %c0_32 = arith.constant 0 : index
      %52 = vector.load %arg14[%c0_31, %c0_32] : memref<16x32xbf16, #tpu.memory_space<vmem>>, vector<16x32xbf16>
      tpu.vector_store %arg14[%c0_31, %c0_32], %51 {strides = array<i32>} : memref<16x32xbf16, #tpu.memory_space<vmem>>, vector<16x32xbf16>,
    } else {
    }
    return
  }
  func.func @transform_0(%arg0: i32, %arg1: i32) -> (i32, i32) {
    %c0_i32 = arith.constant 0 : i32
    %c0_i32_0 = arith.constant 0 : i32
    return %arg0, %c0_i32 : i32, i32
  }
  func.func @transform_1(%arg0: i32, %arg1: i32) -> (i32, i32) {
    %c0_i32 = arith.constant 0 : i32
    %c0_i32_0 = arith.constant 0 : i32
    return %arg0, %c0_i32 : i32, i32
  }
  func.func @transform_2(%arg0: i32, %arg1: i32) -> (i32, i32) {
    %c0_i32 = arith.constant 0 : i32
    %c0_i32_0 = arith.constant 0 : i32
    %c0_i32_1 = arith.constant 0 : i32
    return %c0_i32, %c0_i32_0 : i32, i32
  }
  func.func @transform_3(%arg0: i32, %arg1: i32) -> (i32, i32) {
    %c0_i32 = arith.constant 0 : i32
    %c0_i32_0 = arith.constant 0 : i32
    %c0_i32_1 = arith.constant 0 : i32
    return %c0_i32, %c0_i32_0 : i32, i32
  }
  func.func @transform_4(%arg0: i32, %arg1: i32) -> (i32, i32) {
    %c0_i32 = arith.constant 0 : i32
    %c0_i32_0 = arith.constant 0 : i32
    %c0_i32_1 = arith.constant 0 : i32
    return %c0_i32, %c0_i32_0 : i32, i32
  }
  func.func @transform_5(%arg0: i32, %arg1: i32) -> (i32, i32) {
    %c0_i32 = arith.constant 0 : i32
    %c0_i32_0 = arith.constant 0 : i32
    %c0_i32_1 = arith.constant 0 : i32
    return %c0_i32, %c0_i32_0 : i32, i32
  }
  func.func @transform_6(%arg0: i32, %arg1: i32) -> (i32, i32) {
    %c0_i32 = arith.constant 0 : i32
    %c0_i32_0 = arith.constant 0 : i32
    return %c0_i32, %arg1 : i32, i32
  }
  func.func @transform_7(%arg0: i32, %arg1: i32) -> (i32, i32) {
    %c0_i32 = arith.constant 0 : i32
    %c0_i32_0 = arith.constant 0 : i32
    return %c0_i32, %arg1 : i32, i32
  }
  func.func @transform_8(%arg0: i32, %arg1: i32) -> (i32, i32) {
    %c0_i32 = arith.constant 0 : i32
    %c0_i32_0 = arith.constant 0 : i32
    return %arg1, %c0_i32 : i32, i32
  }
  func.func @transform_9(%arg0: i32, %arg1: i32) -> (i32, i32) {
    %c0_i32 = arith.constant 0 : i32
    %c0_i32_0 = arith.constant 0 : i32
    %c0_i32_1 = arith.constant 0 : i32
    return %c0_i32, %c0_i32_0 : i32, i32
  }
  func.func @transform_10(%arg0: i32, %arg1: i32) -> (i32, i32) {
    %c0_i32 = arith.constant 0 : i32
    %c0_i32_0 = arith.constant 0 : i32
    %c0_i32_1 = arith.constant 0 : i32
    return %c0_i32, %c0_i32_0 : i32, i32
  }
  func.func @transform_11(%arg0: i32, %arg1: i32) -> (i32, i32) {
    %c0_i32 = arith.constant 0 : i32
    %c0_i32_0 = arith.constant 0 : i32
    %c0_i32_1 = arith.constant 0 : i32
    return %c0_i32, %c0_i32_0 : i32, i32
  }
  func.func @transform_12(%arg0: i32, %arg1: i32) -> (i32, i32) {
    %c0_i32 = arith.constant 0 : i32
    %c0_i32_0 = arith.constant 0 : i32
    return %arg0, %c0_i32 : i32, i32
  }
}

</mosaic_0001>

<bundles_post_ra>
// kernel: transformer_encoder.5
= control target key start
LH: loop header
LB: loop body
LE: loop exit
PB: predicated region body
PF: predicated region fallthrough
CT: control target
= control target key end

     0   :  { %vm76_vm0 = vcmask 261120   ;;  %v543_v0 = vmov 0.0   ;;  %vm544_vm1 = vmmov 0   ;;  %vm432_vm2 = vcmask 257024   ;;  %s712_s2 = inlined_call_operand.vmem [shape: bf16[32,32], index: 2, kind: input, shape index: {}]   ;;  %s713_s0 = inlined_call_operand.vmem [shape: bf16[16,32], index: 0, kind: input, shape index: {}]   ;;  %s714_s1 = inlined_call_operand.vmem [shape: bf16[16,32], index: 1, kind: input, shape index: {}]   ;;  %s715_s3 = inlined_call_operand.vmem [shape: f32[1,32], index: 3, kind: input, shape index: {}]   ;;  %s716_s6 = inlined_call_operand.vmem [shape: bf16[32,128], index: 6, kind: input, shape index: {}]   ;;  %s717_s8 = inlined_call_operand.vmem [shape: bf16[128,32], index: 8, kind: input, shape index: {}]   ;;  %s718_s4 = inlined_call_operand.vmem [shape: f32[1,32], index: 4, kind: input, shape index: {}]   ;;  %s719_s5 = inlined_call_operand.vmem [shape: f32[1,32], index: 5, kind: input, shape index: {}]   ;;  %s720_s7 = inlined_call_operand.vmem [shape: f32[1,128], index: 7, kind: input, shape index: {}]   ;;  %s721_s9 = inlined_call_operand.vmem [shape: f32[1,32], index: 9, kind: input, shape index: {}]   ;;  %s722_s10 = inlined_call_operand.vmem [shape: f32[1,32], index: 10, kind: input, shape index: {}]   ;;  %s723_s11 = inlined_call_operand.vmem [shape: f32[1,32], index: 11, kind: input, shape index: {}]   ;;  %s724_s12 = inlined_call_operand.vmem [shape: bf16[16,32], index: 12, kind: output, shape index: {}]  }
   0x1   :  { %484 = vmatprep.subr.bf16.mxu1 %v543_v0  ;;  %v522_v1 = vld [vmem:[%s712_s2] sm:$0xff]   ;;  %488 = vmatprep.mubr.msk.bf16.mxu1 %vm544_vm1, %v543_v0  ;;  %174 = vst.msk [vmem:[#allocation3] sm:$0xff] %vm76_vm0, %v543_v0  ;;  %175 = vst.msk [vmem:[#allocation3 + $0x8] sm:$0xff] %vm76_vm0, %v543_v0  ;;  %v523_v2 = vld [vmem:[%s712_s2 + $0x8] sm:$0xff]  }
   0x2   :  { %500 = vmatprep.subr.bf16.mxu0 %v543_v0  ;;  %516 = vmatprep.mubr.msk.bf16.mxu0 %vm544_vm1, %v543_v0  ;;  %v524_v3 = vld [vmem:[%s713_s0] sm:$0xff]   ;;  %v526_v29 = vld [vmem:[%s716_s6 + $0x8] sm:$0xff]   ;;  %v529_v32 = vld [vmem:[%s717_s8 + $0x10] sm:$0xff]  }
   0x3   :  { %485 = vmatpush3.bf16.msra.mxu1 %v522_v1  ;;  %v466_v4 = vld [vmem:[%s714_s1] sm:$0xff]   ;;  %v528_v31 = vld [vmem:[%s717_s8 + $0x8] sm:$0xff]   ;;  %v530_v33 = vld [vmem:[%s717_s8 + $0x18] sm:$0xff]  }
   0x4   :  { %486 = vmatprep.subr.bf16.mxu1 %v543_v0  ;;  %v439_v5 = vld [vmem:[%s715_s3] ss:$0 sm:$0xff]  ;;  %v467_v6 = vunpack.c.l.bf16 %v466_v4  ;;  %v468_v10 = vunpack.c.h.bf16 %v466_v4  ;;  %v532_v35 = vld [vmem:[%s717_s8 + $0x28] sm:$0xff]   ;;  %v533_v55 = vld [vmem:[%s717_s8 + $0x30] sm:$0xff]  }
   0x5   :  { %v525_v28 = vld [vmem:[%s716_s6] sm:$0xff]   ;;  %v534_v56 = vld [vmem:[%s717_s8 + $0x38] sm:$0xff]  }
   0x6   :  { %v527_v30 = vld [vmem:[%s717_s8] sm:$0xff]  }
   0x7   :  { %487 = vmatpush3.bf16.msra.mxu1 %v523_v2  ;;  %501 = vmatpush3.bf16.msra.mxu0 %v527_v30  ;;  %v531_v34 = vld [vmem:[%s717_s8 + $0x20] sm:$0xff]  }
   0x8   :  { %492 = vmatprep.subr.bf16.mxu1 %v543_v0  ;;  %502 = vmatprep.subr.bf16.mxu0 %v543_v0  ;;  %v444_v43 = vld [vmem:[%s718_s4] ss:$0 sm:$0xff] }
   0x9   :  { %v445_v45 = vld [vmem:[%s719_s5] ss:$0 sm:$0xff] }
   0xa   :  { %489 = vmatmul.mubr.msk.bf16.vlgmr.msra.gmra.mrb[0].mxu1 %vm76_vm0, %v524_v3  ;;  %v446_v57 = vld [vmem:[%s720_s7] ss:$0 sm:$0xff] }
   0xb   :  { %496 = vmatprep.mubr.msk.bf16.mxu1 %vm544_vm1, %v543_v0  ;;  %493 = vmatpush3.bf16.msra.mxu1 %v525_v28 }
   0xc   :  { %494 = vmatprep.subr.bf16.mxu1 %v543_v0  ;;  %503 = vmatpush3.bf16.msra.mxu0 %v528_v31 }
   0xd   :  { %504 = vmatprep.subr.bf16.mxu0 %v543_v0 }
   0xf   :  { %495 = vmatpush3.bf16.msra.mxu1 %v526_v29 }
  0x10   :  { %505 = vmatpush3.bf16.msra.mxu0 %v529_v32 }
  0x11   :  { %506 = vmatprep.subr.bf16.mxu0 %v543_v0 }
  0x14   :  { %507 = vmatpush3.bf16.msra.mxu0 %v530_v33 }
  0x15   :  { %508 = vmatprep.subr.bf16.mxu0 %v543_v0 }
  0x18   :  { %509 = vmatpush3.bf16.msra.mxu0 %v531_v34 }
  0x19   :  { %510 = vmatprep.subr.bf16.mxu0 %v543_v0 }
  0x1c   :  { %511 = vmatpush3.bf16.msra.mxu0 %v532_v35 }
  0x1d   :  { %512 = vmatprep.subr.bf16.mxu0 %v543_v0 }
  0x20   :  { %513 = vmatpush3.bf16.msra.mxu0 %v533_v55 }
  0x21   :  { %514 = vmatprep.subr.bf16.mxu0 %v543_v0  ;;  %v250_v0 = vld [vmem:[#allocation3] sm:$0xff] }
  0x24   :  { %515 = vmatpush3.bf16.msra.mxu0 %v534_v56 }
  0xdd   :  { %v114_v7 = vpop.f32.mrb[0].mxu1 }
  0xde   :  { %v115_v8 = vadd.f32 %v439_v5, %v114_v7  ;;  %v490_v9 = vpop.f32.mrb[1].mxu1 }
  0xdf   :  { %v117_v11 = vpop.f32.mrb[2].mxu1 }
  0xe0   :  { %v118_v12 = vadd.f32 %v439_v5, %v117_v11  ;;  %v491_v13 = vpop.f32.mrb[3].mxu1  ;;  %v125_v14 = vadd.f32 %v467_v6, %v115_v8  ;;  %v251_v5 = vld [vmem:[#allocation3 + $0x8] sm:$0xff]  ;;  %v458_v11 = vld [vmem:[%s721_s9] ss:$0 sm:$0xff] }
  0xe2   :  { %v127_v15 = vsel %vm76_vm0, %v125_v14, 0.0  ;;  %v126_v16 = vadd.f32 %v468_v10, %v118_v12 }
  0xe3   :  { %128 = vadd.xlane.f32.xlu0 %v127_v15 }
  0xe4   :  { %v130_v17 = vsel %vm76_vm0, %v126_v16, 0.0 }
  0xe7   :  { %131 = vadd.xlane.f32.xlu0 %v130_v17 }
 0x170   :  { %v129_v18 = vpop.xlane.xlu0 %128 }
 0x171   :  { %v134_v19 = vmul.f32 0.03125, %v129_v18 }
 0x173   :  { %v136_v20 = vsub.f32 %v125_v14, %v134_v19 }
 0x174   :  { %v132_v21 = vpop.xlane.xlu0 %131 }
 0x175   :  { %v135_v22 = vmul.f32 0.03125, %v132_v21  ;;  %v138_v23 = vmul.f32 %v136_v20, %v136_v20 }
 0x177   :  { %v137_v24 = vsub.f32 %v126_v16, %v135_v22  ;;  %v140_v25 = vsel %vm76_vm0, %v138_v23, 0.0 }
 0x178   :  { %141 = vadd.xlane.f32.xlu1 %v140_v25 }
 0x179   :  { %v139_v26 = vmul.f32 %v137_v24, %v137_v24 }
 0x17b   :  { %v143_v27 = vsel %vm76_vm0, %v139_v26, 0.0 }
 0x17c   :  { %144 = vadd.xlane.f32.xlu1 %v143_v27 }
 0x205   :  { %v142_v36 = vpop.xlane.xlu1 %141 }
 0x206   :  { %v146_v37 = vmul.f32 0.03125, %v142_v36 }
 0x208   :  { %v148_v38 = vadd.f32 1e-05, %v146_v37  ;;  %v459_v37 = vld [vmem:[%s722_s10] ss:$0 sm:$0xff] }
 0x209   :  { %v145_v39 = vpop.xlane.xlu1 %144 }
 0x20a   :  { %535 = vrsqrt.f32 %v148_v38  ;;  %v147_v40 = vmul.f32 0.03125, %v145_v39 }
 0x20c   :  { %v149_v41 = vadd.f32 1e-05, %v147_v40  ;;  %v460_v40 = vld [vmem:[%s723_s11] ss:$0 sm:$0xff] }
 0x20e   :  { %537 = vrsqrt.f32 %v149_v41 }
 0x214   :  { %v536_v42 = vpop.eup %535 }
 0x215   :  { %v152_v44 = vmul.f32 %v536_v42, %v136_v20 }
 0x217   :  { %v161_v46 = vmul.f32 %v444_v43, %v152_v44 }
 0x218   :  { %v538_v47 = vpop.eup %537 }
 0x219   :  { %v170_v48 = vadd.f32 %v445_v45, %v161_v46  ;;  %v153_v49 = vmul.f32 %v538_v47, %v137_v24 }
 0x21b   :  { %172 = vst.msk [vmem:[#allocation2] sm:$0xff] %vm76_vm0, %v170_v48  ;;  %v162_v50 = vmul.f32 %v444_v43, %v153_v49 }
 0x21d   :  { %v171_v51 = vadd.f32 %v445_v45, %v162_v50 }
 0x21f   :  { %173 = vst.msk [vmem:[#allocation2 + $0x8] sm:$0xff] %vm76_vm0, %v171_v51 }
 0x222   :  { %v176_v52 = vld [vmem:[#allocation2] sm:$0xff] }
 0x226   :  { %v177_v53 = vld [vmem:[#allocation2 + $0x8] sm:$0xff] }
 0x227   :  { %v178_v54 = vpack.c.bf16 %v177_v53, %v176_v52 }
 0x229   :  { %497 = vmatmul.mubr.msk.bf16.vlgmr.msra.gmra.mrb[4].mxu1 %vm76_vm0, %v178_v54 }
 0x2fc   :  { %v240_v58 = vpop.f32.mrb[4].mxu1 }
 0x2fd   :  { %v241_v59 = vadd.f32 %v446_v57, %v240_v58  ;;  %v498_v60 = vpop.f32.mrb[5].mxu1 }
 0x2fe   :  { %v243_v61 = vpop.f32.mrb[6].mxu1 }
 0x2ff   :  { %v244_v62 = vadd.f32 %v446_v57, %v243_v61  ;;  %v499_v63 = vpop.f32.mrb[7].mxu1  ;;  %v247_v1 = vmax.f32 %v241_v59, 0.0 }
 0x301   :  { %v248_v2 = vmax.f32 %v244_v62, 0.0 }
 0x303   :  { %v249_v3 = vpack.c.bf16 %v248_v2, %v247_v1 }
 0x305   :  { %517 = vmatmul.mubr.bf16.vlgmr.msra.gmra.mrb[0].mxu0 %v249_v3 }
 0x3d8   :  { %v350_v4 = vpop.f32.mrb[0].mxu0 }
 0x3d9   :  { %v357_v6 = vadd.f32 %v350_v4, %v250_v0  ;;  %v518_v7 = vpop.f32.mrb[1].mxu0 }
 0x3da   :  { %v353_v8 = vpop.f32.mrb[2].mxu0 }
 0x3db   :  { %359 = vst.msk [vmem:[#allocation3] sm:$0xff] %vm76_vm0, %v357_v6  ;;  %v358_v9 = vadd.f32 %v353_v8, %v251_v5  ;;  %v519_v10 = vpop.f32.mrb[3].mxu0 }
 0x3dd   :  { %360 = vst.msk [vmem:[#allocation3 + $0x8] sm:$0xff] %vm76_vm0, %v358_v9 }
 0x3e2   :  { %v364_v12 = vld [vmem:[#allocation3] sm:$0xff] }
 0x3e3   :  { %v373_v13 = vadd.f32 %v458_v11, %v364_v12 }
 0x3e4   :  { %v365_v14 = vld [vmem:[#allocation3 + $0x8] sm:$0xff] }
 0x3e5   :  { %v377_v15 = vadd.f32 %v373_v13, %v176_v52  ;;  %v374_v16 = vadd.f32 %v458_v11, %v365_v14 }
 0x3e7   :  { %v379_v17 = vsel %vm76_vm0, %v377_v15, 0.0  ;;  %v378_v18 = vadd.f32 %v374_v16, %v177_v53 }
 0x3e8   :  { %380 = vadd.xlane.f32.xlu0 %v379_v17 }
 0x3e9   :  { %v382_v19 = vsel %vm76_vm0, %v378_v18, 0.0 }
 0x3ea   :  { %383 = vadd.xlane.f32.xlu1 %v382_v19 }
 0x475   :  { %v381_v20 = vpop.xlane.xlu0 %380 }
 0x476   :  { %v386_v21 = vmul.f32 0.03125, %v381_v20 }
 0x477   :  { %v384_v22 = vpop.xlane.xlu1 %383 }
 0x478   :  { %v388_v23 = vsub.f32 %v377_v15, %v386_v21  ;;  %v387_v24 = vmul.f32 0.03125, %v384_v22 }
 0x47a   :  { %v389_v25 = vsub.f32 %v378_v18, %v387_v24  ;;  %v390_v26 = vmul.f32 %v388_v23, %v388_v23 }
 0x47c   :  { %v392_v27 = vsel %vm76_vm0, %v390_v26, 0.0  ;;  %v391_v28 = vmul.f32 %v389_v25, %v389_v25 }
 0x47d   :  { %393 = vadd.xlane.f32.xlu0 %v392_v27 }
 0x47e   :  { %v395_v29 = vsel %vm76_vm0, %v391_v28, 0.0 }
 0x47f   :  { %396 = vadd.xlane.f32.xlu1 %v395_v29 }
 0x50a   :  { %v394_v30 = vpop.xlane.xlu0 %393 }
 0x50b   :  { %v398_v31 = vmul.f32 0.03125, %v394_v30 }
 0x50c   :  { %v397_v32 = vpop.xlane.xlu1 %396 }
 0x50d   :  { %v400_v33 = vadd.f32 1e-05, %v398_v31  ;;  %v399_v34 = vmul.f32 0.03125, %v397_v32 }
 0x50f   :  { %539 = vrsqrt.f32 %v400_v33  ;;  %v401_v35 = vadd.f32 1e-05, %v399_v34 }
 0x511   :  { %541 = vrsqrt.f32 %v401_v35 }
 0x519   :  { %v540_v36 = vpop.eup %539 }
 0x51a   :  { %v404_v38 = vmul.f32 %v540_v36, %v388_v23 }
 0x51b   :  { %v542_v39 = vpop.eup %541 }
 0x51c   :  { %v413_v41 = vmul.f32 %v459_v37, %v404_v38  ;;  %v405_v42 = vmul.f32 %v542_v39, %v389_v25 }
 0x51e   :  { %v422_v43 = vadd.f32 %v460_v40, %v413_v41  ;;  %v414_v44 = vmul.f32 %v459_v37, %v405_v42 }
 0x520   :  { %v463_v45 = vpack.c.bf16 %v422_v43, %v422_v43  ;;  %v423_v46 = vadd.f32 %v460_v40, %v414_v44 }
 0x522   :  { %433 = vst.msk [vmem:[%s724_s12] sm:$0xf] %vm432_vm2, %v463_v45  ;;  %v464_v47 = vpack.c.bf16 %v423_v46, %v423_v46 }
 0x524   :  { %434 = vst.msk [vmem:[%s724_s12 + $0x4] sm:$0xf] %vm432_vm2, %v464_v47 }

// kernel: transformer_encoder.7
= control target key start
LH: loop header
LB: loop body
LE: loop exit
PB: predicated region body
PF: predicated region fallthrough
CT: control target
= control target key end

     0   :  { %v583_v1 = vmov 0.0   ;;  %vm584_vm0 = vmmov 0   ;;  %vm77_vm1 = vcmask 261120   ;;  %s761_s0 = inlined_call_operand.vmem [shape: bf16[16,32], index: 0, kind: input, shape index: {}]   ;;  %s762_s1 = inlined_call_operand.vmem [shape: bf16[16,32], index: 1, kind: input, shape index: {}]   ;;  %s763_s2 = inlined_call_operand.vmem [shape: bf16[32,32], index: 2, kind: input, shape index: {}]   ;;  %s764_s3 = inlined_call_operand.vmem [shape: f32[1,32], index: 3, kind: input, shape index: {}]   ;;  %s765_s4 = inlined_call_operand.vmem [shape: f32[1,32], index: 4, kind: input, shape index: {}]   ;;  %s766_s5 = inlined_call_operand.vmem [shape: f32[1,32], index: 5, kind: input, shape index: {}]   ;;  %s767_s6 = inlined_call_operand.vmem [shape: bf16[32,128], index: 6, kind: input, shape index: {}]   ;;  %s768_s7 = inlined_call_operand.vmem [shape: f32[1,128], index: 7, kind: input, shape index: {}]   ;;  %s769_s8 = inlined_call_operand.vmem [shape: bf16[128,32], index: 8, kind: input, shape index: {}]   ;;  %s770_s9 = inlined_call_operand.vmem [shape: f32[1,32], index: 9, kind: input, shape index: {}]   ;;  %s771_s10 = inlined_call_operand.vmem [shape: f32[1,32], index: 10, kind: input, shape index: {}]   ;;  %s772_s11 = inlined_call_operand.vmem [shape: f32[1,32], index: 11, kind: input, shape index: {}]   ;;  %s773_s12 = inlined_call_operand.hbm [shape: bf16[16,32], index: 12, kind: output, shape index: {}]  }
   0x1   :  { %v538_v0 = vld [vmem:[%s763_s2] sm:$0xff]   ;;  %497 = vmatprep.subr.bf16.mxu1 %v583_v1  ;;  %513 = vmatprep.subr.bf16.mxu0 %v583_v1  ;;  %v539_v2 = vld [vmem:[%s763_s2 + $0x8] sm:$0xff]   ;;  %175 = vst.msk [vmem:[#allocation3] sm:$0xff] %vm77_vm1, %v583_v1  ;;  %176 = vst.msk [vmem:[#allocation3 + $0x8] sm:$0xff] %vm77_vm1, %v583_v1 }
   0x2   :  { %498 = vmatpush3.bf16.msra.mxu1 %v538_v0  ;;  %501 = vmatprep.mubr.msk.bf16.mxu1 %vm584_vm0, %v583_v1  ;;  %v540_v3 = vld [vmem:[%s761_s0] sm:$0xff]  }
   0x3   :  { %499 = vmatprep.subr.bf16.mxu1 %v583_v1  ;;  %529 = vmatprep.mubr.msk.bf16.mxu0 %vm584_vm0, %v583_v1 }
   0x6   :  { %500 = vmatpush3.bf16.msra.mxu1 %v539_v2 }
   0x7   :  { %505 = vmatprep.subr.bf16.mxu1 %v583_v1 }
   0x9   :  { %502 = vmatmul.mubr.msk.bf16.vlgmr.msra.gmra.mrb[0].mxu1 %vm77_vm1, %v540_v3 }
   0xa   :  { %509 = vmatprep.mubr.msk.bf16.mxu1 %vm584_vm0, %v583_v1 }
   0xb   :  { %17 = vsyncpa [#allocation5], 0  ;;  %v479_v4 = vld [vmem:[%s762_s1] sm:$0xff]   ;;  %v542_v29 = vld [vmem:[%s767_s6 + $0x8] sm:$0xff]   ;;  %s585_s13 = smov [#allocation4]   ;;  %vm433_vm2 = vcmask 257024  }
   0xc   :  { %v452_v5 = vld [vmem:[%s764_s3] ss:$0 sm:$0xff]  ;;  %v480_v6 = vunpack.c.l.bf16 %v479_v4  ;;  %v481_v10 = vunpack.c.h.bf16 %v479_v4  ;;  %v544_v31 = vld [vmem:[%s769_s8 + $0x8] sm:$0xff]   ;;  %v545_v32 = vld [vmem:[%s769_s8 + $0x10] sm:$0xff]   ;;  %s441_s14 = sshll.u32 %s585_s13, 4  ;;  %s442_s14 = int_to_ptr.vmem [resolvable:$true] %s441_s14 }
   0xd   :  { %v541_v28 = vld [vmem:[%s767_s6] sm:$0xff]   ;;  %v546_v33 = vld [vmem:[%s769_s8 + $0x18] sm:$0xff]   ;;  %v548_v35 = vld [vmem:[%s769_s8 + $0x28] sm:$0xff]   ;;  %p564_p1 = scmp.lt.s32.totalorder %s442_s14, %s442_s14 }
   0xe   :  { %506 = vmatpush3.bf16.msra.mxu1 %v541_v28  ;;  %v543_v30 = vld [vmem:[%s769_s8] sm:$0xff]   ;;  %v549_v55 = vld [vmem:[%s769_s8 + $0x30] sm:$0xff]   ;;  %v550_v56 = vld [vmem:[%s769_s8 + $0x38] sm:$0xff]  }
   0xf   :  { %507 = vmatprep.subr.bf16.mxu1 %v583_v1  ;;  %514 = vmatpush3.bf16.msra.mxu0 %v543_v30  ;;  %v547_v34 = vld [vmem:[%s769_s8 + $0x20] sm:$0xff]  }
  0x10   :  { %515 = vmatprep.subr.bf16.mxu0 %v583_v1  ;;  %v457_v43 = vld [vmem:[%s765_s4] ss:$0 sm:$0xff] }
  0x11   :  { %v458_v45 = vld [vmem:[%s766_s5] ss:$0 sm:$0xff] }
  0x12   :  { %508 = vmatpush3.bf16.msra.mxu1 %v542_v29  ;;  %v459_v57 = vld [vmem:[%s768_s7] ss:$0 sm:$0xff] }
  0x13   :  { %516 = vmatpush3.bf16.msra.mxu0 %v544_v31 }
  0x14   :  { %517 = vmatprep.subr.bf16.mxu0 %v583_v1 }
  0x17   :  { %518 = vmatpush3.bf16.msra.mxu0 %v545_v32 }
  0x18   :  { %519 = vmatprep.subr.bf16.mxu0 %v583_v1 }
  0x1b   :  { %520 = vmatpush3.bf16.msra.mxu0 %v546_v33 }
  0x1c   :  { %521 = vmatprep.subr.bf16.mxu0 %v583_v1 }
  0x1f   :  { %522 = vmatpush3.bf16.msra.mxu0 %v547_v34 }
  0x20   :  { %523 = vmatprep.subr.bf16.mxu0 %v583_v1 }
  0x23   :  { %524 = vmatpush3.bf16.msra.mxu0 %v548_v35 }
  0x24   :  { %525 = vmatprep.subr.bf16.mxu0 %v583_v1 }
  0x27   :  { %526 = vmatpush3.bf16.msra.mxu0 %v549_v55 }
  0x28   :  { %527 = vmatprep.subr.bf16.mxu0 %v583_v1  ;;  %v251_v1 = vld [vmem:[#allocation3] sm:$0xff] }
  0x2b   :  { %528 = vmatpush3.bf16.msra.mxu0 %v550_v56 }
  0xdc   :  { %v115_v7 = vpop.f32.mrb[0].mxu1 }
  0xdd   :  { %v116_v8 = vadd.f32 %v452_v5, %v115_v7  ;;  %v503_v9 = vpop.f32.mrb[1].mxu1 }
  0xde   :  { %v118_v11 = vpop.f32.mrb[2].mxu1 }
  0xdf   :  { %v119_v12 = vadd.f32 %v452_v5, %v118_v11  ;;  %v504_v13 = vpop.f32.mrb[3].mxu1  ;;  %v126_v14 = vadd.f32 %v480_v6, %v116_v8  ;;  %v252_v5 = vld [vmem:[#allocation3 + $0x8] sm:$0xff]  ;;  %v471_v11 = vld [vmem:[%s770_s9] ss:$0 sm:$0xff] }
  0xe1   :  { %v128_v15 = vsel %vm77_vm1, %v126_v14, 0.0  ;;  %v127_v16 = vadd.f32 %v481_v10, %v119_v12 }
  0xe2   :  { %129 = vadd.xlane.f32.xlu0 %v128_v15 }
  0xe3   :  { %v131_v17 = vsel %vm77_vm1, %v127_v16, 0.0 }
  0xe6   :  { %132 = vadd.xlane.f32.xlu0 %v131_v17 }
 0x16f   :  { %v130_v18 = vpop.xlane.xlu0 %129 }
 0x170   :  { %v135_v19 = vmul.f32 0.03125, %v130_v18 }
 0x172   :  { %v137_v20 = vsub.f32 %v126_v14, %v135_v19 }
 0x173   :  { %v133_v21 = vpop.xlane.xlu0 %132 }
 0x174   :  { %v136_v22 = vmul.f32 0.03125, %v133_v21  ;;  %v139_v23 = vmul.f32 %v137_v20, %v137_v20 }
 0x176   :  { %v138_v24 = vsub.f32 %v127_v16, %v136_v22  ;;  %v141_v25 = vsel %vm77_vm1, %v139_v23, 0.0 }
 0x177   :  { %142 = vadd.xlane.f32.xlu1 %v141_v25 }
 0x178   :  { %v140_v26 = vmul.f32 %v138_v24, %v138_v24 }
 0x17a   :  { %v144_v27 = vsel %vm77_vm1, %v140_v26, 0.0 }
 0x17b   :  { %145 = vadd.xlane.f32.xlu1 %v144_v27 }
 0x204   :  { %v143_v36 = vpop.xlane.xlu1 %142 }
 0x205   :  { %v147_v37 = vmul.f32 0.03125, %v143_v36 }
 0x207   :  { %v149_v38 = vadd.f32 1e-05, %v147_v37  ;;  %v472_v37 = vld [vmem:[%s771_s10] ss:$0 sm:$0xff]  ;;  %s559_s10 = scalar_lea.vmem %s442_s14, 128 }
 0x208   :  { %v146_v39 = vpop.xlane.xlu1 %145  ;;  %p560_p0 = scmp.ne.s32.totalorder %s442_s14, %s559_s10  ;;  %p565_p2 = scmp.lt.s32.totalorder %s559_s10, %s559_s10 }
 0x209   :  { %551 = vrsqrt.f32 %v149_v38  ;;  %v148_v40 = vmul.f32 0.03125, %v146_v39 }
 0x20a   :  { %p566_p3 = por %p565_p2, %p564_p1 }
 0x20b   :  { %v150_v41 = vadd.f32 1e-05, %v148_v40  ;;  %v473_v40 = vld [vmem:[%s772_s11] ss:$0 sm:$0xff] }
 0x20c   :  { %p567_p4 = pnand %p566_p3, %p560_p0 }
 0x20d   :  { %553 = vrsqrt.f32 %v150_v41 }
 0x213   :  { %v552_v42 = vpop.eup %551 }
 0x214   :  { %v153_v44 = vmul.f32 %v552_v42, %v137_v20 }
 0x216   :  { %v162_v46 = vmul.f32 %v457_v43, %v153_v44 }
 0x217   :  { %v554_v47 = vpop.eup %553 }
 0x218   :  { %v171_v48 = vadd.f32 %v458_v45, %v162_v46  ;;  %v154_v49 = vmul.f32 %v554_v47, %v138_v24 }
 0x21a   :  { %173 = vst.msk [vmem:[#allocation2] sm:$0xff] %vm77_vm1, %v171_v48  ;;  %v163_v50 = vmul.f32 %v457_v43, %v154_v49 }
 0x21c   :  { %v172_v51 = vadd.f32 %v458_v45, %v163_v50 }
 0x21e   :  { %174 = vst.msk [vmem:[#allocation2 + $0x8] sm:$0xff] %vm77_vm1, %v172_v51 }
 0x221   :  { %v177_v52 = vld [vmem:[#allocation2] sm:$0xff] }
 0x225   :  { %v178_v53 = vld [vmem:[#allocation2 + $0x8] sm:$0xff] }
 0x226   :  { %v179_v54 = vpack.c.bf16 %v178_v53, %v177_v52 }
 0x228   :  { %510 = vmatmul.mubr.msk.bf16.vlgmr.msra.gmra.mrb[4].mxu1 %vm77_vm1, %v179_v54 }
 0x2fb   :  { %v241_v58 = vpop.f32.mrb[4].mxu1 }
 0x2fc   :  { %v242_v59 = vadd.f32 %v459_v57, %v241_v58  ;;  %v511_v60 = vpop.f32.mrb[5].mxu1 }
 0x2fd   :  { %v244_v61 = vpop.f32.mrb[6].mxu1 }
 0x2fe   :  { %v245_v62 = vadd.f32 %v459_v57, %v244_v61  ;;  %v512_v63 = vpop.f32.mrb[7].mxu1  ;;  %v248_v0 = vmax.f32 %v242_v59, 0.0 }
 0x300   :  { %v249_v2 = vmax.f32 %v245_v62, 0.0 }
 0x302   :  { %v250_v3 = vpack.c.bf16 %v249_v2, %v248_v0 }
 0x304   :  { %530 = vmatmul.mubr.bf16.vlgmr.msra.gmra.mrb[0].mxu0 %v250_v3 }
 0x3d7   :  { %v351_v4 = vpop.f32.mrb[0].mxu0 }
 0x3d8   :  { %v358_v6 = vadd.f32 %v351_v4, %v251_v1  ;;  %v531_v7 = vpop.f32.mrb[1].mxu0 }
 0x3d9   :  { %v354_v8 = vpop.f32.mrb[2].mxu0 }
 0x3da   :  { %360 = vst.msk [vmem:[#allocation3] sm:$0xff] %vm77_vm1, %v358_v6  ;;  %v359_v9 = vadd.f32 %v354_v8, %v252_v5  ;;  %v532_v10 = vpop.f32.mrb[3].mxu0 }
 0x3dc   :  { %361 = vst.msk [vmem:[#allocation3 + $0x8] sm:$0xff] %vm77_vm1, %v359_v9 }
 0x3e1   :  { %v365_v12 = vld [vmem:[#allocation3] sm:$0xff] }
 0x3e2   :  { %v374_v13 = vadd.f32 %v471_v11, %v365_v12 }
 0x3e3   :  { %v366_v14 = vld [vmem:[#allocation3 + $0x8] sm:$0xff] }
 0x3e4   :  { %v378_v15 = vadd.f32 %v374_v13, %v177_v52  ;;  %v375_v16 = vadd.f32 %v471_v11, %v366_v14 }
 0x3e6   :  { %v380_v17 = vsel %vm77_vm1, %v378_v15, 0.0  ;;  %v379_v18 = vadd.f32 %v375_v16, %v178_v53 }
 0x3e7   :  { %381 = vadd.xlane.f32.xlu0 %v380_v17 }
 0x3e8   :  { %v383_v19 = vsel %vm77_vm1, %v379_v18, 0.0 }
 0x3e9   :  { %384 = vadd.xlane.f32.xlu1 %v383_v19 }
 0x474   :  { %v382_v20 = vpop.xlane.xlu0 %381 }
 0x475   :  { %v387_v21 = vmul.f32 0.03125, %v382_v20 }
 0x476   :  { %v385_v22 = vpop.xlane.xlu1 %384 }
 0x477   :  { %v389_v23 = vsub.f32 %v378_v15, %v387_v21  ;;  %v388_v24 = vmul.f32 0.03125, %v385_v22 }
 0x479   :  { %v390_v25 = vsub.f32 %v379_v18, %v388_v24  ;;  %v391_v26 = vmul.f32 %v389_v23, %v389_v23 }
 0x47b   :  { %v393_v27 = vsel %vm77_vm1, %v391_v26, 0.0  ;;  %v392_v28 = vmul.f32 %v390_v25, %v390_v25 }
 0x47c   :  { %394 = vadd.xlane.f32.xlu0 %v393_v27 }
 0x47d   :  { %v396_v29 = vsel %vm77_vm1, %v392_v28, 0.0 }
 0x47e   :  { %397 = vadd.xlane.f32.xlu1 %v396_v29 }
 0x509   :  { %v395_v30 = vpop.xlane.xlu0 %394 }
 0x50a   :  { %v399_v31 = vmul.f32 0.03125, %v395_v30 }
 0x50b   :  { %v398_v32 = vpop.xlane.xlu1 %397 }
 0x50c   :  { %v401_v33 = vadd.f32 1e-05, %v399_v31  ;;  %v400_v34 = vmul.f32 0.03125, %v398_v32 }
 0x50e   :  { %555 = vrsqrt.f32 %v401_v33  ;;  %v402_v35 = vadd.f32 1e-05, %v400_v34 }
 0x510   :  { %557 = vrsqrt.f32 %v402_v35 }
 0x518   :  { %v556_v36 = vpop.eup %555 }
 0x519   :  { %v405_v38 = vmul.f32 %v556_v36, %v389_v23 }
 0x51a   :  { %v558_v39 = vpop.eup %557 }
 0x51b   :  { %v406_v41 = vmul.f32 %v558_v39, %v390_v25  ;;  %v414_v42 = vmul.f32 %v472_v37, %v405_v38 }
 0x51d   :  { %v415_v43 = vmul.f32 %v472_v37, %v406_v41  ;;  %v423_v44 = vadd.f32 %v473_v40, %v414_v42 }
 0x51f   :  { %v424_v45 = vadd.f32 %v473_v40, %v415_v43  ;;  %v476_v46 = vpack.c.bf16 %v423_v44, %v423_v44 }
 0x521   :  { %v477_v47 = vpack.c.bf16 %v424_v45, %v424_v45  ;;  %434 = vst.msk [vmem:[#allocation4] sm:$0xf] %vm433_vm2, %v476_v46 }
 0x523   :  { %435 = vst.msk [vmem:[#allocation4 + $0x4] sm:$0xf] %vm433_vm2, %v477_v47 }
 0x524   :  { %570 = shalt.err (!%p567_p4)
}
 0x525   :  { %s571_s16 = scalar_lea.hbm %s773_s12, 128 }
 0x526   :  { %p572_p5 = scmp.ne.s32.totalorder %s773_s12, %s571_s16  ;;  %p575_p6 = scmp.lt.u32.totalorder %s571_s16, %s773_s12 }
 0x528   :  { %p577_p7 = pnand %p575_p6, %p572_p5 }
 0x52a   :  { %580 = shalt.err (!%p577_p7)
}
 0x52b   :  { %s586_s20 = smov 64   ;;  %s587_s21 = smov 4  }
 0x52c   :  { %447 = dma.vmem_to_hbm [thread:$0]  %s442_s14, 128, %s773_s12, [#allocation5], %s586_s20, %s586_s20, %s587_s21  }
 0x52d   :  { %581 = dma.done.wait [#allocation5], 128  }
 0x52e   :  { %582 = vsyncadd [#allocation5], 4294967168 }
 0x52f   :  { %451 = vsyncpa [#allocation5], 1 }

// kernel: transformer_encoder.4
= control target key start
LH: loop header
LB: loop body
LE: loop exit
PB: predicated region body
PF: predicated region fallthrough
CT: control target
= control target key end

     0   :  { %s941_s12 = smov 0   ;;  %s1050_s0 = inlined_call_operand.vmem [shape: bf16[2,32,8], index: 0, kind: input, shape index: {}]   ;;  %s1051_s1 = inlined_call_operand.vmem [shape: f32[2,1,8], index: 1, kind: input, shape index: {}]   ;;  %s1052_s2 = inlined_call_operand.vmem [shape: bf16[8,24], index: 2, kind: input, shape index: {}]   ;;  %s1053_s3 = inlined_call_operand.vmem [shape: bf16[2,32,8], index: 3, kind: output, shape index: {}]  }
   0x1 LB: > { %s779_s13 = sadd.s32 4294967295, %s915_s12   ;;  %p783_p0 = scmp.ge.s32.totalorder %s915_s12, 1  ;;  %s915_s12 = sphi %s941_s12, %s13_s12  }
   0x2   : > { %p145_p1 = scmp.lt.s32.totalorder %s915_s12, 3 }
   0x4   : > { %p146_p2 = pnand %p783_p0, %p145_p1 }
   0x5   : > { %v190_v0 = vld [vmem:[%s1052_s2] sm:$0xf] (!%p146_p2)  ;;  %vm208_vm0 = vcmask (!%p146_p2), 1043456   ;;  %p172_p3 = scmp.lt.s32.totalorder (!%p146_p2), %s779_s13, 1  ;;  %vm201_vm1 = vcmask (!%p146_p2), 64512   ;;  %v917_v4 = vmov (!%p146_p2), 0.0  }
   0x6   : > { %149 = sbr.rel (%p146_p2) target bundleno = 1164 (0x48c), region = 32  ;;  %878 = vmatprep.subr.msk.bf16.mxu0 (!%p146_p2), %vm208_vm0, %v190_v0  ;;  %v210_v1 = vsel (!%p146_p2), %vm208_vm0, %v190_v0, 0  ;;  %830 = vmatprep.subr.bf16.mxu1 (!%p146_p2), %v917_v4  ;;  %vm918_vm2 = vmmov (!%p146_p2), 0   ;;  %s919_s20 = smov (!%p146_p2), 120   ;;  %vm380_vm3 = vcmask (!%p146_p2), 60416  }
   0x7   : > { %825 = vmatpush3.bf16.msra.mxu0 (!%p146_p2), %v210_v1  ;;  %832 = vmatprep.mubr.msk.bf16.mxu1 (!%p146_p2), %vm918_vm2, %v917_v4  ;;  %s920_s24 = smov (!%p146_p2), 112  }
   0x8   : > { %836 = vmatprep.subr.bf16.mxu0 (!%p146_p2), %v917_v4 }
   0xd   : > { %s1055_s13 = smov (!%p172_p3, %s779_s13), 1 }
   0xe   : > { %s803_s16 = sshll.u32 %s1055_s13, 4  ;;  %s179_s23 = scalar_lea.vmem %s1051_s1, %s1055_s13 }
   0xf   : > { %s176_s19 = scalar_lea.vmem %s1050_s0, %s803_s16  ;;  %v792_v21 = vld [vmem:[%s179_s23] ss:$0 sm:$0xff]  ;;  %s184_s27 = scalar_lea.vmem %s1053_s3, %s803_s16 }
  0x10   : > { %v891_v2 = vld [vmem:[%s176_s19] sm:$0xff]   ;;  %v892_v3 = vld [vmem:[%s176_s19 + $0x8] sm:$0xff]  }
  0x11   : > { %826 = vmatprep.mubr.msk.bf16.mxu0 %vm201_vm1, %v891_v2 }
  0x12   : > { %827 = vmatmul.mubr.msk.bf16.vlgmr.msra.gmra.mrb[0].mxu0 %vm201_vm1, %v892_v3 }
  0x13   : > { %838 = vmatprep.mubr.msk.bf16.mxu0 %vm918_vm2, %v917_v4 }
  0xe5   : > { %v828_v5 = vpop.f32.mrb[0].mxu0 }
  0xe6   : > { %v246_v6 = vpop.f32.mrb[1].mxu0 }
  0xe7   : > { %v829_v7 = vpop.f32.mrb[2].mxu0 }
  0xe8   : > { %v970_v8 = vpack.c.bf16 %v829_v7, %v828_v5  ;;  %v249_v9 = vpop.f32.mrb[3].mxu0 }
  0xe9   : > { %v972_v10 = vpack.c.bf16 %v249_v9, %v246_v6 }
  0xea   : > { %494 = vrot.lane.b32.xlu1 %v970_v8, %s919_s20  ;;  %v977_v11 = vrot.slane %v970_v8, 4 }
  0xeb   : > { %271 = vrot.lane.b32.xlu0 %v972_v10, %s919_s20  ;;  %v980_v12 = vrot.slane %v972_v10, 4 }
  0xee   : > { %605 = vrot.lane.b32.xlu1 %v977_v11, %s919_s20 }
  0xef   : > { %383 = vrot.lane.b32.xlu0 %v980_v12, %s919_s20 }
 0x15c   : > { %v495_v17 = vpop.permute.xlu1 %494 }
 0x15d   : > { %v272_v13 = vpop.permute.xlu0 %271  ;;  %v500_v18 = vsel %vm201_vm1, %v495_v17, 0 }
 0x15e   : > { %v277_v14 = vsel %vm201_vm1, %v272_v13, 0 }
 0x15f   : > { %831 = vmatpush3.bf16.xpose.msra.mxu1 %v277_v14 }
 0x160   : > { %842 = vmatprep.subr.bf16.mxu1 %v917_v4  ;;  %v606_v19 = vpop.permute.xlu1 %605 }
 0x161   : > { %v384_v15 = vpop.permute.xlu0 %383  ;;  %v611_v20 = vsel %vm201_vm1, %v606_v19, 0 }
 0x162   : > { %v389_v16 = vsel %vm201_vm1, %v384_v15, 0 }
 0x166   : > { %833 = vmatmul.mubr.msk.bf16.vlgmr.msra.gmra.mrb[0].mxu1 %vm201_vm1, %v972_v10 }
 0x167   : > { %843 = vmatpush3.bf16.xpose.msra.mxu1 %v389_v16  ;;  %844 = vmatprep.mubr.msk.bf16.mxu1 %vm918_vm2, %v917_v4 }
 0x168   : > { %854 = vmatprep.subr.bf16.mxu1 %v917_v4 }
 0x16e   : > { %845 = vmatmul.mubr.msk.bf16.vlgmr.msra.gmra.mrb[4].mxu1 %vm201_vm1, %v980_v12 }
 0x16f   : > { %855 = vmatpush3.bf16.xpose.msra.mxu1 %v500_v18  ;;  %856 = vmatprep.mubr.msk.bf16.mxu1 %vm918_vm2, %v917_v4 }
 0x170   : > { %866 = vmatprep.subr.bf16.mxu1 %v917_v4 }
 0x176   : > { %857 = vmatmul.mubr.msk.bf16.vlgmr.msra.gmra.mrb[8].mxu1 %vm201_vm1, %v970_v8 }
 0x177   : > { %867 = vmatpush3.bf16.xpose.msra.mxu1 %v611_v20  ;;  %868 = vmatprep.mubr.msk.bf16.mxu1 %vm918_vm2, %v917_v4 }
 0x17e   : > { %869 = vmatmul.mubr.msk.bf16.vlgmr.msra.gmra.mrb[12].mxu1 %vm201_vm1, %v977_v11 }
 0x239   : > { %v313_v22 = vpop.f32.mrb[0].mxu1 }
 0x23a   : > { %v314_v23 = vadd.f32 %v792_v21, %v313_v22  ;;  %v834_v24 = vpop.f32.mrb[1].mxu1 }
 0x23b   : > { %v316_v25 = vpop.f32.mrb[2].mxu1 }
 0x23c   : > { %v835_v26 = vpop.f32.mrb[3].mxu1  ;;  %v319_v27 = vsel %vm201_vm1, %v314_v23, -inf }
 0x23d   : > { %320 = vmax.xlane.f32.xlu0 %v319_v27 }
 0x241   : > { %v425_v28 = vpop.f32.mrb[4].mxu1 }
 0x242   : > { %v426_v29 = vadd.f32 %v792_v21, %v425_v28  ;;  %v846_v30 = vpop.f32.mrb[5].mxu1 }
 0x243   : > { %v428_v31 = vpop.f32.mrb[6].mxu1 }
 0x244   : > { %v847_v32 = vpop.f32.mrb[7].mxu1  ;;  %v431_v33 = vsel %vm201_vm1, %v426_v29, -inf }
 0x245   : > { %432 = vmax.xlane.f32.xlu1 %v431_v33 }
 0x249   : > { %v536_v34 = vpop.f32.mrb[8].mxu1 }
 0x24a   : > { %v537_v35 = vadd.f32 %v792_v21, %v536_v34  ;;  %v858_v36 = vpop.f32.mrb[9].mxu1 }
 0x24b   : > { %v539_v37 = vpop.f32.mrb[10].mxu1 }
 0x24c   : > { %v859_v38 = vpop.f32.mrb[11].mxu1  ;;  %v542_v39 = vsel %vm201_vm1, %v537_v35, -inf }
 0x24d   : > { %543 = vmax.xlane.f32.xlu0 %v542_v39 }
 0x251   : > { %v647_v40 = vpop.f32.mrb[12].mxu1 }
 0x252   : > { %v648_v41 = vadd.f32 %v792_v21, %v647_v40  ;;  %v870_v42 = vpop.f32.mrb[13].mxu1 }
 0x253   : > { %v650_v43 = vpop.f32.mrb[14].mxu1 }
 0x254   : > { %v871_v44 = vpop.f32.mrb[15].mxu1  ;;  %v653_v45 = vsel %vm201_vm1, %v648_v41, -inf }
 0x255   : > { %654 = vmax.xlane.f32.xlu0 %v653_v45 }
 0x2ca   : > { %v321_v46 = vpop.xlane.xlu0 %320 }
 0x2cb   : > { %v322_v47 = vsub.f32 %v314_v23, %v321_v46 }
 0x2cd   : > { %v323_v48 = vmul.f32 1.442695, %v322_v47 }
 0x2cf   : > { %893 = vpow2.f32 %v323_v48 }
 0x2d2   : > { %v433_v49 = vpop.xlane.xlu1 %432 }
 0x2d3   : > { %v434_v50 = vsub.f32 %v426_v29, %v433_v49 }
 0x2d5   : > { %v435_v51 = vmul.f32 1.442695, %v434_v50 }
 0x2d7   : > { %895 = vpow2.f32 %v435_v51 }
 0x2d9   : > { %v894_v52 = vpop.eup %893 }
 0x2da   : > { %v325_v53 = vsel %vm201_vm1, %v894_v52, 0.0  ;;  %v544_v54 = vpop.xlane.xlu0 %543 }
 0x2db   : > { %326 = vadd.xlane.f32.xlu1 %v325_v53  ;;  %v545_v62 = vsub.f32 %v537_v35, %v544_v54 }
 0x2dd   : > { %v546_v63 = vmul.f32 1.442695, %v545_v62 }
 0x2e1   : > { %v896_v55 = vpop.eup %895 }
 0x2e2   : > { %v655_v56 = vpop.xlane.xlu0 %654  ;;  %v437_v57 = vsel %vm201_vm1, %v896_v55, 0.0 }
 0x2e3   : > { %v656_v58 = vsub.f32 %v648_v41, %v655_v56  ;;  %438 = vadd.xlane.f32.xlu0 %v437_v57 }
 0x2e5   : > { %v657_v59 = vmul.f32 1.442695, %v656_v58 }
 0x2e7   : > { %897 = vpow2.f32 %v657_v59 }
 0x2e8   : > { %899 = vpow2.f32 %v546_v63 }
 0x2ec   : > { %331 = vrot.lane.b32.xlu1 %v972_v10, %s920_s24 }
 0x2f1   : > { %v898_v60 = vpop.eup %897 }
 0x2f2   : > { %v659_v61 = vsel %vm201_vm1, %v898_v60, 0.0  ;;  %v900_v0 = vpop.eup %899 }
 0x2f3   : > { %660 = vadd.xlane.f32.xlu0 %v659_v61  ;;  %v548_v1 = vsel %vm201_vm1, %v900_v0, 0.0 }
 0x309   : > { %443 = vrot.lane.b32.xlu0 %v980_v12, %s920_s24 }
 0x310   : > { %549 = vadd.xlane.f32.xlu1 %v548_v1 }
 0x321   : > { %554 = vrot.lane.b32.xlu1 %v970_v8, %s920_s24 }
 0x325   : > { %665 = vrot.lane.b32.xlu1 %v977_v11, %s920_s24 }
 0x368   : > { %v327_v2 = vpop.xlane.xlu1 %326 }
 0x369   : > { %901 = vrcp.f32 %v327_v2 }
 0x36c   : > { %v332_v3 = vpop.permute.xlu1 %331 }
 0x36d   : > { %v337_v5 = vsel %vm208_vm0, %v332_v3, 0 }
 0x36e   : > { %837 = vmatpush3.bf16.msra.mxu0 %v337_v5 }
 0x36f   : > { %848 = vmatprep.subr.bf16.mxu0 %v917_v4 }
 0x370   : > { %v439_v7 = vpop.xlane.xlu0 %438 }
 0x371   : > { %903 = vrcp.f32 %v439_v7 }
 0x373   : > { %v902_v6 = vpop.eup %901 }
 0x374   : > { %v329_v9 = vmul.f32 %v902_v6, %v894_v52 }
 0x376   : > { %v330_v10 = vpack.c.bf16 %v329_v9, %v329_v9 }
 0x378   : > { %839 = vmatmul.mubr.msk.bf16.vlgmr.msra.gmra.mrb[4].mxu0 %vm201_vm1, %v330_v10 }
 0x379   : > { %850 = vmatprep.mubr.msk.bf16.mxu0 %vm918_vm2, %v917_v4 }
 0x37b   : > { %v904_v8 = vpop.eup %903 }
 0x37c   : > { %v441_v12 = vmul.f32 %v904_v8, %v896_v55 }
 0x37e   : > { %v442_v15 = vpack.c.bf16 %v441_v12, %v441_v12 }
 0x380   : > { %v661_v11 = vpop.xlane.xlu0 %660 }
 0x384   : > { %v444_v13 = vpop.permute.xlu0 %443 }
 0x385   : > { %v449_v14 = vsel %vm208_vm0, %v444_v13, 0 }
 0x386   : > { %849 = vmatpush3.bf16.msra.mxu0 %v449_v14 }
 0x387   : > { %860 = vmatprep.subr.bf16.mxu0 %v917_v4 }
 0x389   : > { %851 = vmatmul.mubr.msk.bf16.vlgmr.msra.gmra.mrb[8].mxu0 %vm201_vm1, %v442_v15 }
 0x38a   : > { %862 = vmatprep.mubr.msk.bf16.mxu0 %vm918_vm2, %v917_v4 }
 0x39d   : > { %v550_v16 = vpop.xlane.xlu1 %549 }
 0x39e   : > { %905 = vrcp.f32 %v550_v16 }
 0x39f   : > { %907 = vrcp.f32 %v661_v11 }
 0x3a1   : > { %v555_v17 = vpop.permute.xlu1 %554 }
 0x3a2   : > { %v560_v18 = vsel %vm208_vm0, %v555_v17, 0 }
 0x3a3   : > { %861 = vmatpush3.bf16.msra.mxu0 %v560_v18 }
 0x3a4   : > { %872 = vmatprep.subr.bf16.mxu0 %v917_v4 }
 0x3a5   : > { %v666_v21 = vpop.permute.xlu1 %665 }
 0x3a6   : > { %v671_v24 = vsel %vm208_vm0, %v666_v21, 0 }
 0x3a8   : > { %v906_v19 = vpop.eup %905 }
 0x3a9   : > { %v552_v20 = vmul.f32 %v906_v19, %v900_v0  ;;  %v908_v23 = vpop.eup %907 }
 0x3aa   : > { %v663_v25 = vmul.f32 %v908_v23, %v898_v60 }
 0x3ab   : > { %v553_v22 = vpack.c.bf16 %v552_v20, %v552_v20 }
 0x3ac   : > { %v664_v26 = vpack.c.bf16 %v663_v25, %v663_v25 }
 0x3ad   : > { %863 = vmatmul.mubr.msk.bf16.vlgmr.msra.gmra.mrb[12].mxu0 %vm201_vm1, %v553_v22 }
 0x3ae   : > { %873 = vmatpush3.bf16.msra.mxu0 %v671_v24  ;;  %874 = vmatprep.mubr.msk.bf16.mxu0 %vm918_vm2, %v917_v4 }
 0x3b5   : > { %875 = vmatmul.mubr.msk.bf16.vlgmr.msra.gmra.mrb[16].mxu0 %vm201_vm1, %v664_v26 }
 0x44b   : > { %v373_v27 = vpop.f32.mrb[4].mxu0 }
 0x44c   : > { %v379_v28 = vpack.c.bf16 %v373_v27, %v373_v27  ;;  %v840_v29 = vpop.f32.mrb[5].mxu0 }
 0x44d   : > { %v376_v30 = vpop.f32.mrb[6].mxu0 }
 0x44e   : > { %381 = vst.msk [vmem:[%s184_s27] sm:$0xf] %vm380_vm3, %v379_v28  ;;  %v841_v31 = vpop.f32.mrb[7].mxu0 }
 0x45c   : > { %v485_v32 = vpop.f32.mrb[8].mxu0 }
 0x45d   : > { %v491_v33 = vpack.c.bf16 %v485_v32, %v485_v32  ;;  %v852_v4 = vpop.f32.mrb[9].mxu0 }
 0x45e   : > { %v488_v34 = vpop.f32.mrb[10].mxu0 }
 0x45f   : > { %492 = vst.msk [vmem:[%s184_s27 + $0x4] sm:$0xf] %vm380_vm3, %v491_v33  ;;  %v853_v35 = vpop.f32.mrb[11].mxu0 }
 0x480   : > { %v596_v36 = vpop.f32.mrb[12].mxu0 }
 0x481   : > { %v602_v37 = vpack.c.bf16 %v596_v36, %v596_v36  ;;  %v864_v38 = vpop.f32.mrb[13].mxu0 }
 0x482   : > { %v599_v39 = vpop.f32.mrb[14].mxu0 }
 0x483   : > { %603 = vst.msk [vmem:[%s184_s27 + $0x8] sm:$0xf] %vm380_vm3, %v602_v37  ;;  %v865_v40 = vpop.f32.mrb[15].mxu0 }
 0x488   : > { %v707_v41 = vpop.f32.mrb[16].mxu0 }
 0x489   : > { %v713_v42 = vpack.c.bf16 %v707_v41, %v707_v41  ;;  %v876_v43 = vpop.f32.mrb[17].mxu0 }
 0x48a   : > { %v710_v44 = vpop.f32.mrb[18].mxu0 }
 0x48b   : > { %714 = vst.msk [vmem:[%s184_s27 + $0xc] sm:$0xf] %vm380_vm3, %v713_v42  ;;  %v877_v45 = vpop.f32.mrb[19].mxu0 }
 0x48c PF: > { %s13_s12 = sadd.s32 1, %s915_s12  }
 0x48d   : > { %p10_p4 = scmp.ge.s32.totalorder %s13_s12, 4  }
 0x48f   :  { %12 = sbr.rel (!%p10_p4) target bundleno = 1 (0x1), region = 65 }

</bundles_post_ra>
